<compile_context>
chip_gen: v7x
topology: tpu7x:2x2x1
jax: 0.10.0
libtpu: 0.0.40
codegen_flags: <defaults>
</compile_context>

<pallas_src>
import functools

import numpy as np
import jax
import jax.numpy as jnp
from jax import lax
from jax.experimental import pallas as pl
from jax.experimental.pallas import tpu as pltpu

NUM_SEP_LAYERS = 3  # SeparableConvBlock(dim=3)

# The 8 non-center taps of the 3x3 depthwise stencil, in a fixed order shared
# by the kernel (weight/roll indexing) and the wrapper (mask construction).
TAPS = tuple((ki, kj) for ki in range(3) for kj in range(3) if (ki, kj) != (1, 1))


def _separable_down_kernel(x_ref, mask_ref, dww_ref, dwb_ref, pww_ref,
                           pwb_ref, fw_ref, fb_ref, o_ref, *, W2):
    # x_ref : (4*C, L)  -- 4 unfolded 2x2 pool-window slots (slot-major) x C
    # mask  : (8, L)    -- f32 edge masks, one row per non-center tap (TAPS order)
    # dww   : (3*9, C, 1)   depthwise 3x3 weights, [layer*9 + ki*3 + kj]
    # dwb   : (3, C, 1)     depthwise bias
    # pww   : (3*C, C, 1)   pointwise 1x1, [layer*C + in_ch] -> (C_out, 1)
    # pwb   : (3, C, 1)     pointwise bias
    # fw    : (C, Co, 1)    final 1x1, [in_ch] -> (Co, 1)
    # fb    : (Co, 1)
    # o_ref : (Co, L)
    C4, Lp = x_ref.shape
    C = C4 // 4

    # ---- MaxPool2d(2): elementwise max over the 4 window slots -------------
    # Rows are slot-major, so both maxes are (nearly) sublane-tile aligned.
    x = x_ref[...]
    m = jnp.maximum(x[0:2 * C, :], x[2 * C:4 * C, :])       # (2C, L)
    p = jnp.maximum(m[0:C, :], m[C:2 * C, :]).astype(jnp.float32)  # (C, L)

    mask = mask_ref[...]                                     # (8, L) f32

    # ---- 3 x SeparableConv2d --------------------------------------------
    # TODO(synk): SeparableConv2d's source is not in the provided snippet; it
    # is assumed to be depthwise3x3(groups=C, pad=1)+bias -> pointwise1x1+bias
    # -> ReLU, with Dropout(dp_rate=0.0) an inference no-op.
    for layer in range(NUM_SEP_LAYERS):
        # Depthwise 3x3, pad=1: fused roll -> mask -> scale -> accumulate.
        acc = p * dww_ref[layer * 9 + 4]                     # center tap, (C,1)
        for t, (ki, kj) in enumerate(TAPS):
            shift = (-((ki - 1) * W2 + (kj - 1))) % Lp       # lane roll amount
            v = pltpu.roll(p, shift, 1)                      # XLU lane rotate
            acc = acc + (v * mask[t:t + 1, :]) * dww_ref[layer * 9 + ki * 3 + kj]
        acc = acc + dwb_ref[layer]                           # (C,1) bias

        # Pointwise 1x1 (C -> C) as VPU broadcast-FMAs, channels on sublanes.
        pw = acc[0:1, :] * pww_ref[layer * C + 0]            # (1,L)*(C,1)->(C,L)
        for i in range(1, C):
            pw = pw + acc[i:i + 1, :] * pww_ref[layer * C + i]
        pw = pw + pwb_ref[layer]
        p = jnp.maximum(pw, 0.0)                             # ReLU

    # ---- final 1x1 conv (C -> Co): single lane-dense (Co, L) store ---------
    out = p[0:1, :] * fw_ref[0]
    for i in range(1, C):
        out = out + p[i:i + 1, :] * fw_ref[i]
    out = out + fb_ref[...]
    o_ref[...] = out.astype(o_ref.dtype)


def _full_spec(a):
    """BlockSpec covering the whole (small) array, replicated across the grid."""
    nd = a.ndim
    return pl.BlockSpec(a.shape, lambda g, _nd=nd: (0,) * _nd)


def separable_down(x, dww, dwb, pww, pwb, fw, fb):
    N, C, H, W = x.shape
    Co = fb.shape[0]
    assert H % 2 == 0 and W % 2 == 0, "MaxPool2d(2) path requires even H and W"
    H2, W2 = H // 2, W // 2
    HW2 = H2 * W2
    itemsize = jnp.dtype(x.dtype).itemsize

    # ---- VMEM budget (generation-aware, with 2x double-buffer headroom) ----
    try:
        vmem_phys = int(getattr(pltpu.get_tpu_info(), "vmem_capacity_bytes"))
    except Exception:  # not on TPU / attribute unavailable: assume v7x (64 MiB)
        vmem_phys = 64 << 20
    budget = min(36 << 20, vmem_phys // 3)      # in-flight (double-buffered) bytes

    # ---- images-per-block chooser -------------------------------------------
    # key = (lane-aligned L, grid has >= 2 steps for v7x's 2 TCs, block size)
    per_img = HW2 * (4 * C + Co) * itemsize
    best = None
    for nb in range(1, N + 1):
        if N % nb:
            continue
        if nb > 1 and 2 * nb * per_img > budget:
            continue
        key = ((nb * HW2) % 128 == 0, (N // nb) >= 2, nb)
        if best is None or key > best[0]:
            best = (key, nb)
    Nb = best[1]
    G = N // Nb
    L = Nb * HW2
    Lp = ((L + 127) // 128) * 128               # lane-dense (padded) width

    # ---- layout plumbing (one transpose pass; see header note) -------------
    # (N,C,H,W) -> (G, slot(4)*C, L): pool-window slots & channels on sublanes,
    # (image, row, col) flattened on lanes.
    xr = x.reshape(G, Nb, C, H2, 2, W2, 2)
    xr = xr.transpose(0, 4, 6, 2, 1, 3, 5)      # (G, 2, 2, C, Nb, H2, W2)
    xk = xr.reshape(G, 4 * C, L)
    if Lp != L:
        xk = jnp.pad(xk, ((0, 0), (0, 0), (0, Lp - L)))

    # ---- grid-invariant edge masks (built once, host-side) ------------------
    lane = np.arange(Lp)
    col = lane % W2
    row = (lane // W2) % H2
    rows = []
    for ki, kj in TAPS:
        mk = np.ones((Lp,), np.float32)
        if ki == 0:
            mk *= (row != 0)
        if ki == 2:
            mk *= (row != H2 - 1)
        if kj == 0:
            mk *= (col != 0)
        if kj == 2:
            mk *= (col != W2 - 1)
        rows.append(mk)
    mask_k = jnp.asarray(np.stack(rows, axis=0))                    # (8, Lp) f32

    # ---- weights pre-shaped as broadcastable (C,1)/(Co,1) VMEM columns ------
    f32 = jnp.float32
    dww_k = dww.astype(f32).transpose(0, 2, 3, 1).reshape(NUM_SEP_LAYERS * 9, C, 1)
    dwb_k = dwb.astype(f32).reshape(NUM_SEP_LAYERS, C, 1)
    pww_k = pww.astype(f32).transpose(0, 2, 1).reshape(NUM_SEP_LAYERS * C, C, 1)
    pwb_k = pwb.astype(f32).reshape(NUM_SEP_LAYERS, C, 1)
    fw_k = fw.astype(f32).transpose(1, 0).reshape(C, Co, 1)
    fb_k = fb.astype(f32).reshape(Co, 1)

    kernel = functools.partial(_separable_down_kernel, W2=W2)
    out = pl.pallas_call(
        kernel,
        out_shape=jax.ShapeDtypeStruct((G, Co, Lp), x.dtype),
        grid=(G,),
        in_specs=[pl.BlockSpec((None, 4 * C, Lp), lambda g: (g, 0, 0)),
                  _full_spec(mask_k), _full_spec(dww_k), _full_spec(dwb_k),
                  _full_spec(pww_k), _full_spec(pwb_k), _full_spec(fw_k),
                  _full_spec(fb_k)],
        out_specs=pl.BlockSpec((None, Co, Lp), lambda g: (g, 0, 0)),
        compiler_params=pltpu.CompilerParams(
            dimension_semantics=("parallel",),
            vmem_limit_bytes=48 << 20),
    )(xk, mask_k, dww_k, dwb_k, pww_k, pwb_k, fw_k, fb_k)

    # (G, Co, Lp) -> (N, Co, H2, W2)
    out = out[:, :, :L].reshape(G, Co, Nb, H2, W2)
    return out.transpose(0, 2, 1, 3, 4).reshape(N, Co, H2, W2)


def _reference(x, dww, dwb, pww, pwb, fw, fb):
    """Plain-JAX reference using lax conv / reduce_window (NCHW)."""
    C = x.shape[1]
    y = lax.reduce_window(x, -jnp.inf, lax.max,
                          (1, 1, 2, 2), (1, 1, 2, 2), 'VALID')
    dn = ('NCHW', 'OIHW', 'NCHW')
    for layer in range(NUM_SEP_LAYERS):
        y = lax.conv_general_dilated(y, dww[layer][:, None, :, :], (1, 1),
                                     'SAME', feature_group_count=C,
                                     dimension_numbers=dn)
        y = y + dwb[layer][None, :, None, None]
        y = lax.conv_general_dilated(y, pww[layer][:, :, None, None], (1, 1),
                                     'SAME', dimension_numbers=dn)
        y = y + pwb[layer][None, :, None, None]
        y = jnp.maximum(y, 0.0)
    y = lax.conv_general_dilated(y, fw[:, :, None, None], (1, 1), 'SAME',
                                 dimension_numbers=dn)
    return y + fb[None, :, None, None]


if __name__ == "__main__":
    configs = [
        dict(N=2, C=4, Co=8, H=16, W=16),   # primary: Nb=2, L=128, G=1
        dict(N=4, C=4, Co=8, H=32, W=32),   # cross-vreg rolls, Nb=2, G=2
        dict(N=1, C=4, Co=8, H=16, W=16),   # lane-padding path (L=64 -> 128)
    ]
    key = jax.random.PRNGKey(0)
    for cfg in configs:
        N, C, Co, H, W = cfg["N"], cfg["C"], cfg["Co"], cfg["H"], cfg["W"]
        key, *ks = jax.random.split(key, 8)
        dww = 0.2 * jax.random.normal(ks[0], (NUM_SEP_LAYERS, C, 3, 3), jnp.float32)
        dwb = 0.1 * jax.random.normal(ks[1], (NUM_SEP_LAYERS, C), jnp.float32)
        pww = 0.2 * jax.random.normal(ks[2], (NUM_SEP_LAYERS, C, C), jnp.float32)
        pwb = 0.1 * jax.random.normal(ks[3], (NUM_SEP_LAYERS, C), jnp.float32)
        fw = 0.2 * jax.random.normal(ks[4], (Co, C), jnp.float32)
        fb = 0.1 * jax.random.normal(ks[5], (Co,), jnp.float32)
        x = jax.random.normal(ks[6], (N, C, H, W), jnp.float32)

        out = jax.block_until_ready(separable_down(x, dww, dwb, pww, pwb, fw, fb))
        ref = jax.block_until_ready(_reference(x, dww, dwb, pww, pwb, fw, fb))
        assert out.shape == (N, Co, H // 2, W // 2), out.shape
        max_err = float(jnp.max(jnp.abs(out - ref)))
        assert max_err < 2e-4, f"{cfg}: mismatch vs reference: {max_err}"

    print("KERNEL_OK")
</pallas_src>

<mosaic_0001>
module attributes {stable_mosaic.version = 11 : i64} {
  func.func @_separable_down_kernel(%arg0: i32, %arg1: memref<1x16x128xf32, #tpu.memory_space<vmem>>, %arg2: memref<8x128xf32, #tpu.memory_space<vmem>>, %arg3: memref<27x4x1xf32, #tpu.memory_space<vmem>>, %arg4: memref<3x4x1xf32, #tpu.memory_space<vmem>>, %arg5: memref<12x4x1xf32, #tpu.memory_space<vmem>>, %arg6: memref<3x4x1xf32, #tpu.memory_space<vmem>>, %arg7: memref<4x8x1xf32, #tpu.memory_space<vmem>>, %arg8: memref<8x1xf32, #tpu.memory_space<vmem>>, %arg9: memref<1x8x128xf32, #tpu.memory_space<vmem>>) attributes {dimension_semantics = [#tpu.dimension_semantics<parallel>], iteration_bounds = array<i64: 1>, scalar_prefetch = 0 : i64, scratch_operands = 0 : i64, tpu.core_type = #tpu.core_type<tc>, window_params = [{transform_indices = @transform_0, window_bounds = array<i64: 1, 16, 128>}, {pipeline_mode = #tpu.pipeline_mode<synchronous>, transform_indices = @transform_1, window_bounds = array<i64: 8, 128>}, {pipeline_mode = #tpu.pipeline_mode<synchronous>, transform_indices = @transform_2, window_bounds = array<i64: 27, 4, 1>}, {pipeline_mode = #tpu.pipeline_mode<synchronous>, transform_indices = @transform_3, window_bounds = array<i64: 3, 4, 1>}, {pipeline_mode = #tpu.pipeline_mode<synchronous>, transform_indices = @transform_4, window_bounds = array<i64: 12, 4, 1>}, {pipeline_mode = #tpu.pipeline_mode<synchronous>, transform_indices = @transform_5, window_bounds = array<i64: 3, 4, 1>}, {pipeline_mode = #tpu.pipeline_mode<synchronous>, transform_indices = @transform_6, window_bounds = array<i64: 4, 8, 1>}, {pipeline_mode = #tpu.pipeline_mode<synchronous>, transform_indices = @transform_7, window_bounds = array<i64: 8, 1>}, {transform_indices = @transform_8, window_bounds = array<i64: 1, 8, 128>}]} {
    %c0 = arith.constant 0 : index
    %c0_0 = arith.constant 0 : index
    %c0_1 = arith.constant 0 : index
    %0 = vector.load %arg1[%c0, %c0_0, %c0_1] : memref<1x16x128xf32, #tpu.memory_space<vmem>>, vector<1x16x128xf32>
    %1 = vector.shape_cast %0 : vector<1x16x128xf32> to vector<16x128xf32>
    %2 = vector.extract_strided_slice %1 {offsets = [0, 0], sizes = [8, 128], strides = [1, 1]} : vector<16x128xf32> to vector<8x128xf32>
    %3 = vector.extract_strided_slice %1 {offsets = [8, 0], sizes = [8, 128], strides = [1, 1]} : vector<16x128xf32> to vector<8x128xf32>
    %4 = arith.maximumf %2, %3 : vector<8x128xf32>
    %5 = vector.extract_strided_slice %4 {offsets = [0, 0], sizes = [4, 128], strides = [1, 1]} : vector<8x128xf32> to vector<4x128xf32>
    %6 = vector.extract_strided_slice %4 {offsets = [4, 0], sizes = [4, 128], strides = [1, 1]} : vector<8x128xf32> to vector<4x128xf32>
    %7 = arith.maximumf %5, %6 : vector<4x128xf32>
    %c0_2 = arith.constant 0 : index
    %c0_3 = arith.constant 0 : index
    %8 = vector.load %arg2[%c0_2, %c0_3] : memref<8x128xf32, #tpu.memory_space<vmem>>, vector<8x128xf32>
    %c4 = arith.constant 4 : index
    %c0_4 = arith.constant 0 : index
    %c0_5 = arith.constant 0 : index
    %9 = vector.load %arg3[%c4, %c0_4, %c0_5] : memref<27x4x1xf32, #tpu.memory_space<vmem>>, vector<1x4x1xf32>
    %10 = vector.shape_cast %9 : vector<1x4x1xf32> to vector<4x1xf32>
    %11 = vector.broadcast %10 : vector<4x1xf32> to vector<4x128xf32>
    %12 = arith.mulf %7, %11 : vector<4x128xf32>
    %c9_i32 = arith.constant 9 : i32
    %13 = tpu.dynamic_rotate %7 by %c9_i32 dim 1 : vector<4x128xf32>, i32 -> vector<4x128xf32>
    %14 = vector.extract_strided_slice %8 {offsets = [0, 0], sizes = [1, 128], strides = [1, 1]} : vector<8x128xf32> to vector<1x128xf32>
    %15 = vector.broadcast %14 : vector<1x128xf32> to vector<4x128xf32>
    %16 = arith.mulf %13, %15 : vector<4x128xf32>
    %c0_6 = arith.constant 0 : index
    %c0_7 = arith.constant 0 : index
    %c0_8 = arith.constant 0 : index
    %17 = vector.load %arg3[%c0_6, %c0_7, %c0_8] : memref<27x4x1xf32, #tpu.memory_space<vmem>>, vector<1x4x1xf32>
    %18 = vector.shape_cast %17 : vector<1x4x1xf32> to vector<4x1xf32>
    %19 = vector.broadcast %18 : vector<4x1xf32> to vector<4x128xf32>
    %20 = arith.mulf %16, %19 : vector<4x128xf32>
    %21 = arith.addf %12, %20 : vector<4x128xf32>
    %c8_i32 = arith.constant 8 : i32
    %22 = tpu.dynamic_rotate %7 by %c8_i32 dim 1 : vector<4x128xf32>, i32 -> vector<4x128xf32>
    %23 = vector.extract_strided_slice %8 {offsets = [1, 0], sizes = [1, 128], strides = [1, 1]} : vector<8x128xf32> to vector<1x128xf32>
    %24 = vector.broadcast %23 : vector<1x128xf32> to vector<4x128xf32>
    %25 = arith.mulf %22, %24 : vector<4x128xf32>
    %c1 = arith.constant 1 : index
    %c0_9 = arith.constant 0 : index
    %c0_10 = arith.constant 0 : index
    %26 = vector.load %arg3[%c1, %c0_9, %c0_10] : memref<27x4x1xf32, #tpu.memory_space<vmem>>, vector<1x4x1xf32>
    %27 = vector.shape_cast %26 : vector<1x4x1xf32> to vector<4x1xf32>
    %28 = vector.broadcast %27 : vector<4x1xf32> to vector<4x128xf32>
    %29 = arith.mulf %25, %28 : vector<4x128xf32>
    %30 = arith.addf %21, %29 : vector<4x128xf32>
    %c7_i32 = arith.constant 7 : i32
    %31 = tpu.dynamic_rotate %7 by %c7_i32 dim 1 : vector<4x128xf32>, i32 -> vector<4x128xf32>
    %32 = vector.extract_strided_slice %8 {offsets = [2, 0], sizes = [1, 128], strides = [1, 1]} : vector<8x128xf32> to vector<1x128xf32>
    %33 = vector.broadcast %32 : vector<1x128xf32> to vector<4x128xf32>
    %34 = arith.mulf %31, %33 : vector<4x128xf32>
    %c2 = arith.constant 2 : index
    %c0_11 = arith.constant 0 : index
    %c0_12 = arith.constant 0 : index
    %35 = vector.load %arg3[%c2, %c0_11, %c0_12] : memref<27x4x1xf32, #tpu.memory_space<vmem>>, vector<1x4x1xf32>
    %36 = vector.shape_cast %35 : vector<1x4x1xf32> to vector<4x1xf32>
    %37 = vector.broadcast %36 : vector<4x1xf32> to vector<4x128xf32>
    %38 = arith.mulf %34, %37 : vector<4x128xf32>
    %39 = arith.addf %30, %38 : vector<4x128xf32>
    %c1_i32 = arith.constant 1 : i32
    %40 = tpu.dynamic_rotate %7 by %c1_i32 dim 1 : vector<4x128xf32>, i32 -> vector<4x128xf32>
    %41 = vector.extract_strided_slice %8 {offsets = [3, 0], sizes = [1, 128], strides = [1, 1]} : vector<8x128xf32> to vector<1x128xf32>
    %42 = vector.broadcast %41 : vector<1x128xf32> to vector<4x128xf32>
    %43 = arith.mulf %40, %42 : vector<4x128xf32>
    %c3 = arith.constant 3 : index
    %c0_13 = arith.constant 0 : index
    %c0_14 = arith.constant 0 : index
    %44 = vector.load %arg3[%c3, %c0_13, %c0_14] : memref<27x4x1xf32, #tpu.memory_space<vmem>>, vector<1x4x1xf32>
    %45 = vector.shape_cast %44 : vector<1x4x1xf32> to vector<4x1xf32>
    %46 = vector.broadcast %45 : vector<4x1xf32> to vector<4x128xf32>
    %47 = arith.mulf %43, %46 : vector<4x128xf32>
    %48 = arith.addf %39, %47 : vector<4x128xf32>
    %c127_i32 = arith.constant 127 : i32
    %49 = tpu.dynamic_rotate %7 by %c127_i32 dim 1 : vector<4x128xf32>, i32 -> vector<4x128xf32>
    %50 = vector.extract_strided_slice %8 {offsets = [4, 0], sizes = [1, 128], strides = [1, 1]} : vector<8x128xf32> to vector<1x128xf32>
    %51 = vector.broadcast %50 : vector<1x128xf32> to vector<4x128xf32>
    %52 = arith.mulf %49, %51 : vector<4x128xf32>
    %c5 = arith.constant 5 : index
    %c0_15 = arith.constant 0 : index
    %c0_16 = arith.constant 0 : index
    %53 = vector.load %arg3[%c5, %c0_15, %c0_16] : memref<27x4x1xf32, #tpu.memory_space<vmem>>, vector<1x4x1xf32>
    %54 = vector.shape_cast %53 : vector<1x4x1xf32> to vector<4x1xf32>
    %55 = vector.broadcast %54 : vector<4x1xf32> to vector<4x128xf32>
    %56 = arith.mulf %52, %55 : vector<4x128xf32>
    %57 = arith.addf %48, %56 : vector<4x128xf32>
    %c121_i32 = arith.constant 121 : i32
    %58 = tpu.dynamic_rotate %7 by %c121_i32 dim 1 : vector<4x128xf32>, i32 -> vector<4x128xf32>
    %59 = vector.extract_strided_slice %8 {offsets = [5, 0], sizes = [1, 128], strides = [1, 1]} : vector<8x128xf32> to vector<1x128xf32>
    %60 = vector.broadcast %59 : vector<1x128xf32> to vector<4x128xf32>
    %61 = arith.mulf %58, %60 : vector<4x128xf32>
    %c6 = arith.constant 6 : index
    %c0_17 = arith.constant 0 : index
    %c0_18 = arith.constant 0 : index
    %62 = vector.load %arg3[%c6, %c0_17, %c0_18] : memref<27x4x1xf32, #tpu.memory_space<vmem>>, vector<1x4x1xf32>
    %63 = vector.shape_cast %62 : vector<1x4x1xf32> to vector<4x1xf32>
    %64 = vector.broadcast %63 : vector<4x1xf32> to vector<4x128xf32>
    %65 = arith.mulf %61, %64 : vector<4x128xf32>
    %66 = arith.addf %57, %65 : vector<4x128xf32>
    %c120_i32 = arith.constant 120 : i32
    %67 = tpu.dynamic_rotate %7 by %c120_i32 dim 1 : vector<4x128xf32>, i32 -> vector<4x128xf32>
    %68 = vector.extract_strided_slice %8 {offsets = [6, 0], sizes = [1, 128], strides = [1, 1]} : vector<8x128xf32> to vector<1x128xf32>
    %69 = vector.broadcast %68 : vector<1x128xf32> to vector<4x128xf32>
    %70 = arith.mulf %67, %69 : vector<4x128xf32>
    %c7 = arith.constant 7 : index
    %c0_19 = arith.constant 0 : index
    %c0_20 = arith.constant 0 : index
    %71 = vector.load %arg3[%c7, %c0_19, %c0_20] : memref<27x4x1xf32, #tpu.memory_space<vmem>>, vector<1x4x1xf32>
    %72 = vector.shape_cast %71 : vector<1x4x1xf32> to vector<4x1xf32>
    %73 = vector.broadcast %72 : vector<4x1xf32> to vector<4x128xf32>
    %74 = arith.mulf %70, %73 : vector<4x128xf32>
    %75 = arith.addf %66, %74 : vector<4x128xf32>
    %c119_i32 = arith.constant 119 : i32
    %76 = tpu.dynamic_rotate %7 by %c119_i32 dim 1 : vector<4x128xf32>, i32 -> vector<4x128xf32>
    %77 = vector.extract_strided_slice %8 {offsets = [7, 0], sizes = [1, 128], strides = [1, 1]} : vector<8x128xf32> to vector<1x128xf32>
    %78 = vector.broadcast %77 : vector<1x128xf32> to vector<4x128xf32>
    %79 = arith.mulf %76, %78 : vector<4x128xf32>
    %c8 = arith.constant 8 : index
    %c0_21 = arith.constant 0 : index
    %c0_22 = arith.constant 0 : index
    %80 = vector.load %arg3[%c8, %c0_21, %c0_22] : memref<27x4x1xf32, #tpu.memory_space<vmem>>, vector<1x4x1xf32>
    %81 = vector.shape_cast %80 : vector<1x4x1xf32> to vector<4x1xf32>
    %82 = vector.broadcast %81 : vector<4x1xf32> to vector<4x128xf32>
    %83 = arith.mulf %79, %82 : vector<4x128xf32>
    %84 = arith.addf %75, %83 : vector<4x128xf32>
    %c0_23 = arith.constant 0 : index
    %c0_24 = arith.constant 0 : index
    %c0_25 = arith.constant 0 : index
    %85 = vector.load %arg4[%c0_23, %c0_24, %c0_25] : memref<3x4x1xf32, #tpu.memory_space<vmem>>, vector<1x4x1xf32>
    %86 = vector.shape_cast %85 : vector<1x4x1xf32> to vector<4x1xf32>
    %87 = vector.broadcast %86 : vector<4x1xf32> to vector<4x128xf32>
    %88 = arith.addf %84, %87 : vector<4x128xf32>
    %89 = vector.extract_strided_slice %88 {offsets = [0, 0], sizes = [1, 128], strides = [1, 1]} : vector<4x128xf32> to vector<1x128xf32>
    %c0_26 = arith.constant 0 : index
    %c0_27 = arith.constant 0 : index
    %c0_28 = arith.constant 0 : index
    %90 = vector.load %arg5[%c0_26, %c0_27, %c0_28] : memref<12x4x1xf32, #tpu.memory_space<vmem>>, vector<1x4x1xf32>
    %91 = vector.shape_cast %90 : vector<1x4x1xf32> to vector<4x1xf32>
    %92 = vector.broadcast %89 : vector<1x128xf32> to vector<4x128xf32>
    %93 = vector.broadcast %91 : vector<4x1xf32> to vector<4x128xf32>
    %94 = arith.mulf %92, %93 : vector<4x128xf32>
    %95 = vector.extract_strided_slice %88 {offsets = [1, 0], sizes = [1, 128], strides = [1, 1]} : vector<4x128xf32> to vector<1x128xf32>
    %c1_29 = arith.constant 1 : index
    %c0_30 = arith.constant 0 : index
    %c0_31 = arith.constant 0 : index
    %96 = vector.load %arg5[%c1_29, %c0_30, %c0_31] : memref<12x4x1xf32, #tpu.memory_space<vmem>>, vector<1x4x1xf32>
    %97 = vector.shape_cast %96 : vector<1x4x1xf32> to vector<4x1xf32>
    %98 = vector.broadcast %95 : vector<1x128xf32> to vector<4x128xf32>
    %99 = vector.broadcast %97 : vector<4x1xf32> to vector<4x128xf32>
    %100 = arith.mulf %98, %99 : vector<4x128xf32>
    %101 = arith.addf %94, %100 : vector<4x128xf32>
    %102 = vector.extract_strided_slice %88 {offsets = [2, 0], sizes = [1, 128], strides = [1, 1]} : vector<4x128xf32> to vector<1x128xf32>
    %c2_32 = arith.constant 2 : index
    %c0_33 = arith.constant 0 : index
    %c0_34 = arith.constant 0 : index
    %103 = vector.load %arg5[%c2_32, %c0_33, %c0_34] : memref<12x4x1xf32, #tpu.memory_space<vmem>>, vector<1x4x1xf32>
    %104 = vector.shape_cast %103 : vector<1x4x1xf32> to vector<4x1xf32>
    %105 = vector.broadcast %102 : vector<1x128xf32> to vector<4x128xf32>
    %106 = vector.broadcast %104 : vector<4x1xf32> to vector<4x128xf32>
    %107 = arith.mulf %105, %106 : vector<4x128xf32>
    %108 = arith.addf %101, %107 : vector<4x128xf32>
    %109 = vector.extract_strided_slice %88 {offsets = [3, 0], sizes = [1, 128], strides = [1, 1]} : vector<4x128xf32> to vector<1x128xf32>
    %c3_35 = arith.constant 3 : index
    %c0_36 = arith.constant 0 : index
    %c0_37 = arith.constant 0 : index
    %110 = vector.load %arg5[%c3_35, %c0_36, %c0_37] : memref<12x4x1xf32, #tpu.memory_space<vmem>>, vector<1x4x1xf32>
    %111 = vector.shape_cast %110 : vector<1x4x1xf32> to vector<4x1xf32>
    %112 = vector.broadcast %109 : vector<1x128xf32> to vector<4x128xf32>
    %113 = vector.broadcast %111 : vector<4x1xf32> to vector<4x128xf32>
    %114 = arith.mulf %112, %113 : vector<4x128xf32>
    %115 = arith.addf %108, %114 : vector<4x128xf32>
    %c0_38 = arith.constant 0 : index
    %c0_39 = arith.constant 0 : index
    %c0_40 = arith.constant 0 : index
    %116 = vector.load %arg6[%c0_38, %c0_39, %c0_40] : memref<3x4x1xf32, #tpu.memory_space<vmem>>, vector<1x4x1xf32>
    %117 = vector.shape_cast %116 : vector<1x4x1xf32> to vector<4x1xf32>
    %118 = vector.broadcast %117 : vector<4x1xf32> to vector<4x128xf32>
    %119 = arith.addf %115, %118 : vector<4x128xf32>
    %cst = arith.constant 0.000000e+00 : f32
    %120 = vector.broadcast %cst : f32 to vector<4x128xf32>
    %121 = arith.maximumf %119, %120 : vector<4x128xf32>
    %c13 = arith.constant 13 : index
    %c0_41 = arith.constant 0 : index
    %c0_42 = arith.constant 0 : index
    %122 = vector.load %arg3[%c13, %c0_41, %c0_42] : memref<27x4x1xf32, #tpu.memory_space<vmem>>, vector<1x4x1xf32>
    %123 = vector.shape_cast %122 : vector<1x4x1xf32> to vector<4x1xf32>
    %124 = vector.broadcast %123 : vector<4x1xf32> to vector<4x128xf32>
    %125 = arith.mulf %121, %124 : vector<4x128xf32>
    %c9_i32_43 = arith.constant 9 : i32
    %126 = tpu.dynamic_rotate %121 by %c9_i32_43 dim 1 : vector<4x128xf32>, i32 -> vector<4x128xf32>
    %127 = vector.extract_strided_slice %8 {offsets = [0, 0], sizes = [1, 128], strides = [1, 1]} : vector<8x128xf32> to vector<1x128xf32>
    %128 = vector.broadcast %127 : vector<1x128xf32> to vector<4x128xf32>
    %129 = arith.mulf %126, %128 : vector<4x128xf32>
    %c9 = arith.constant 9 : index
    %c0_44 = arith.constant 0 : index
    %c0_45 = arith.constant 0 : index
    %130 = vector.load %arg3[%c9, %c0_44, %c0_45] : memref<27x4x1xf32, #tpu.memory_space<vmem>>, vector<1x4x1xf32>
    %131 = vector.shape_cast %130 : vector<1x4x1xf32> to vector<4x1xf32>
    %132 = vector.broadcast %131 : vector<4x1xf32> to vector<4x128xf32>
    %133 = arith.mulf %129, %132 : vector<4x128xf32>
    %134 = arith.addf %125, %133 : vector<4x128xf32>
    %c8_i32_46 = arith.constant 8 : i32
    %135 = tpu.dynamic_rotate %121 by %c8_i32_46 dim 1 : vector<4x128xf32>, i32 -> vector<4x128xf32>
    %136 = vector.extract_strided_slice %8 {offsets = [1, 0], sizes = [1, 128], strides = [1, 1]} : vector<8x128xf32> to vector<1x128xf32>
    %137 = vector.broadcast %136 : vector<1x128xf32> to vector<4x128xf32>
    %138 = arith.mulf %135, %137 : vector<4x128xf32>
    %c10 = arith.constant 10 : index
    %c0_47 = arith.constant 0 : index
    %c0_48 = arith.constant 0 : index
    %139 = vector.load %arg3[%c10, %c0_47, %c0_48] : memref<27x4x1xf32, #tpu.memory_space<vmem>>, vector<1x4x1xf32>
    %140 = vector.shape_cast %139 : vector<1x4x1xf32> to vector<4x1xf32>
    %141 = vector.broadcast %140 : vector<4x1xf32> to vector<4x128xf32>
    %142 = arith.mulf %138, %141 : vector<4x128xf32>
    %143 = arith.addf %134, %142 : vector<4x128xf32>
    %c7_i32_49 = arith.constant 7 : i32
    %144 = tpu.dynamic_rotate %121 by %c7_i32_49 dim 1 : vector<4x128xf32>, i32 -> vector<4x128xf32>
    %145 = vector.extract_strided_slice %8 {offsets = [2, 0], sizes = [1, 128], strides = [1, 1]} : vector<8x128xf32> to vector<1x128xf32>
    %146 = vector.broadcast %145 : vector<1x128xf32> to vector<4x128xf32>
    %147 = arith.mulf %144, %146 : vector<4x128xf32>
    %c11 = arith.constant 11 : index
    %c0_50 = arith.constant 0 : index
    %c0_51 = arith.constant 0 : index
    %148 = vector.load %arg3[%c11, %c0_50, %c0_51] : memref<27x4x1xf32, #tpu.memory_space<vmem>>, vector<1x4x1xf32>
    %149 = vector.shape_cast %148 : vector<1x4x1xf32> to vector<4x1xf32>
    %150 = vector.broadcast %149 : vector<4x1xf32> to vector<4x128xf32>
    %151 = arith.mulf %147, %150 : vector<4x128xf32>
    %152 = arith.addf %143, %151 : vector<4x128xf32>
    %c1_i32_52 = arith.constant 1 : i32
    %153 = tpu.dynamic_rotate %121 by %c1_i32_52 dim 1 : vector<4x128xf32>, i32 -> vector<4x128xf32>
    %154 = vector.extract_strided_slice %8 {offsets = [3, 0], sizes = [1, 128], strides = [1, 1]} : vector<8x128xf32> to vector<1x128xf32>
    %155 = vector.broadcast %154 : vector<1x128xf32> to vector<4x128xf32>
    %156 = arith.mulf %153, %155 : vector<4x128xf32>
    %c12 = arith.constant 12 : index
    %c0_53 = arith.constant 0 : index
    %c0_54 = arith.constant 0 : index
    %157 = vector.load %arg3[%c12, %c0_53, %c0_54] : memref<27x4x1xf32, #tpu.memory_space<vmem>>, vector<1x4x1xf32>
    %158 = vector.shape_cast %157 : vector<1x4x1xf32> to vector<4x1xf32>
    %159 = vector.broadcast %158 : vector<4x1xf32> to vector<4x128xf32>
    %160 = arith.mulf %156, %159 : vector<4x128xf32>
    %161 = arith.addf %152, %160 : vector<4x128xf32>
    %c127_i32_55 = arith.constant 127 : i32
    %162 = tpu.dynamic_rotate %121 by %c127_i32_55 dim 1 : vector<4x128xf32>, i32 -> vector<4x128xf32>
    %163 = vector.extract_strided_slice %8 {offsets = [4, 0], sizes = [1, 128], strides = [1, 1]} : vector<8x128xf32> to vector<1x128xf32>
    %164 = vector.broadcast %163 : vector<1x128xf32> to vector<4x128xf32>
    %165 = arith.mulf %162, %164 : vector<4x128xf32>
    %c14 = arith.constant 14 : index
    %c0_56 = arith.constant 0 : index
    %c0_57 = arith.constant 0 : index
    %166 = vector.load %arg3[%c14, %c0_56, %c0_57] : memref<27x4x1xf32, #tpu.memory_space<vmem>>, vector<1x4x1xf32>
    %167 = vector.shape_cast %166 : vector<1x4x1xf32> to vector<4x1xf32>
    %168 = vector.broadcast %167 : vector<4x1xf32> to vector<4x128xf32>
    %169 = arith.mulf %165, %168 : vector<4x128xf32>
    %170 = arith.addf %161, %169 : vector<4x128xf32>
    %c121_i32_58 = arith.constant 121 : i32
    %171 = tpu.dynamic_rotate %121 by %c121_i32_58 dim 1 : vector<4x128xf32>, i32 -> vector<4x128xf32>
    %172 = vector.extract_strided_slice %8 {offsets = [5, 0], sizes = [1, 128], strides = [1, 1]} : vector<8x128xf32> to vector<1x128xf32>
    %173 = vector.broadcast %172 : vector<1x128xf32> to vector<4x128xf32>
    %174 = arith.mulf %171, %173 : vector<4x128xf32>
    %c15 = arith.constant 15 : index
    %c0_59 = arith.constant 0 : index
    %c0_60 = arith.constant 0 : index
    %175 = vector.load %arg3[%c15, %c0_59, %c0_60] : memref<27x4x1xf32, #tpu.memory_space<vmem>>, vector<1x4x1xf32>
    %176 = vector.shape_cast %175 : vector<1x4x1xf32> to vector<4x1xf32>
    %177 = vector.broadcast %176 : vector<4x1xf32> to vector<4x128xf32>
    %178 = arith.mulf %174, %177 : vector<4x128xf32>
    %179 = arith.addf %170, %178 : vector<4x128xf32>
    %c120_i32_61 = arith.constant 120 : i32
    %180 = tpu.dynamic_rotate %121 by %c120_i32_61 dim 1 : vector<4x128xf32>, i32 -> vector<4x128xf32>
    %181 = vector.extract_strided_slice %8 {offsets = [6, 0], sizes = [1, 128], strides = [1, 1]} : vector<8x128xf32> to vector<1x128xf32>
    %182 = vector.broadcast %181 : vector<1x128xf32> to vector<4x128xf32>
    %183 = arith.mulf %180, %182 : vector<4x128xf32>
    %c16 = arith.constant 16 : index
    %c0_62 = arith.constant 0 : index
    %c0_63 = arith.constant 0 : index
    %184 = vector.load %arg3[%c16, %c0_62, %c0_63] : memref<27x4x1xf32, #tpu.memory_space<vmem>>, vector<1x4x1xf32>
    %185 = vector.shape_cast %184 : vector<1x4x1xf32> to vector<4x1xf32>
    %186 = vector.broadcast %185 : vector<4x1xf32> to vector<4x128xf32>
    %187 = arith.mulf %183, %186 : vector<4x128xf32>
    %188 = arith.addf %179, %187 : vector<4x128xf32>
    %c119_i32_64 = arith.constant 119 : i32
    %189 = tpu.dynamic_rotate %121 by %c119_i32_64 dim 1 : vector<4x128xf32>, i32 -> vector<4x128xf32>
    %190 = vector.extract_strided_slice %8 {offsets = [7, 0], sizes = [1, 128], strides = [1, 1]} : vector<8x128xf32> to vector<1x128xf32>
    %191 = vector.broadcast %190 : vector<1x128xf32> to vector<4x128xf32>
    %192 = arith.mulf %189, %191 : vector<4x128xf32>
    %c17 = arith.constant 17 : index
    %c0_65 = arith.constant 0 : index
    %c0_66 = arith.constant 0 : index
    %193 = vector.load %arg3[%c17, %c0_65, %c0_66] : memref<27x4x1xf32, #tpu.memory_space<vmem>>, vector<1x4x1xf32>
    %194 = vector.shape_cast %193 : vector<1x4x1xf32> to vector<4x1xf32>
    %195 = vector.broadcast %194 : vector<4x1xf32> to vector<4x128xf32>
    %196 = arith.mulf %192, %195 : vector<4x128xf32>
    %197 = arith.addf %188, %196 : vector<4x128xf32>
    %c1_67 = arith.constant 1 : index
    %c0_68 = arith.constant 0 : index
    %c0_69 = arith.constant 0 : index
    %198 = vector.load %arg4[%c1_67, %c0_68, %c0_69] : memref<3x4x1xf32, #tpu.memory_space<vmem>>, vector<1x4x1xf32>
    %199 = vector.shape_cast %198 : vector<1x4x1xf32> to vector<4x1xf32>
    %200 = vector.broadcast %199 : vector<4x1xf32> to vector<4x128xf32>
    %201 = arith.addf %197, %200 : vector<4x128xf32>
    %202 = vector.extract_strided_slice %201 {offsets = [0, 0], sizes = [1, 128], strides = [1, 1]} : vector<4x128xf32> to vector<1x128xf32>
    %c4_70 = arith.constant 4 : index
    %c0_71 = arith.constant 0 : index
    %c0_72 = arith.constant 0 : index
    %203 = vector.load %arg5[%c4_70, %c0_71, %c0_72] : memref<12x4x1xf32, #tpu.memory_space<vmem>>, vector<1x4x1xf32>
    %204 = vector.shape_cast %203 : vector<1x4x1xf32> to vector<4x1xf32>
    %205 = vector.broadcast %202 : vector<1x128xf32> to vector<4x128xf32>
    %206 = vector.broadcast %204 : vector<4x1xf32> to vector<4x128xf32>
    %207 = arith.mulf %205, %206 : vector<4x128xf32>
    %208 = vector.extract_strided_slice %201 {offsets = [1, 0], sizes = [1, 128], strides = [1, 1]} : vector<4x128xf32> to vector<1x128xf32>
    %c5_73 = arith.constant 5 : index
    %c0_74 = arith.constant 0 : index
    %c0_75 = arith.constant 0 : index
    %209 = vector.load %arg5[%c5_73, %c0_74, %c0_75] : memref<12x4x1xf32, #tpu.memory_space<vmem>>, vector<1x4x1xf32>
    %210 = vector.shape_cast %209 : vector<1x4x1xf32> to vector<4x1xf32>
    %211 = vector.broadcast %208 : vector<1x128xf32> to vector<4x128xf32>
    %212 = vector.broadcast %210 : vector<4x1xf32> to vector<4x128xf32>
    %213 = arith.mulf %211, %212 : vector<4x128xf32>
    %214 = arith.addf %207, %213 : vector<4x128xf32>
    %215 = vector.extract_strided_slice %201 {offsets = [2, 0], sizes = [1, 128], strides = [1, 1]} : vector<4x128xf32> to vector<1x128xf32>
    %c6_76 = arith.constant 6 : index
    %c0_77 = arith.constant 0 : index
    %c0_78 = arith.constant 0 : index
    %216 = vector.load %arg5[%c6_76, %c0_77, %c0_78] : memref<12x4x1xf32, #tpu.memory_space<vmem>>, vector<1x4x1xf32>
    %217 = vector.shape_cast %216 : vector<1x4x1xf32> to vector<4x1xf32>
    %218 = vector.broadcast %215 : vector<1x128xf32> to vector<4x128xf32>
    %219 = vector.broadcast %217 : vector<4x1xf32> to vector<4x128xf32>
    %220 = arith.mulf %218, %219 : vector<4x128xf32>
    %221 = arith.addf %214, %220 : vector<4x128xf32>
    %222 = vector.extract_strided_slice %201 {offsets = [3, 0], sizes = [1, 128], strides = [1, 1]} : vector<4x128xf32> to vector<1x128xf32>
    %c7_79 = arith.constant 7 : index
    %c0_80 = arith.constant 0 : index
    %c0_81 = arith.constant 0 : index
    %223 = vector.load %arg5[%c7_79, %c0_80, %c0_81] : memref<12x4x1xf32, #tpu.memory_space<vmem>>, vector<1x4x1xf32>
    %224 = vector.shape_cast %223 : vector<1x4x1xf32> to vector<4x1xf32>
    %225 = vector.broadcast %222 : vector<1x128xf32> to vector<4x128xf32>
    %226 = vector.broadcast %224 : vector<4x1xf32> to vector<4x128xf32>
    %227 = arith.mulf %225, %226 : vector<4x128xf32>
    %228 = arith.addf %221, %227 : vector<4x128xf32>
    %c1_82 = arith.constant 1 : index
    %c0_83 = arith.constant 0 : index
    %c0_84 = arith.constant 0 : index
    %229 = vector.load %arg6[%c1_82, %c0_83, %c0_84] : memref<3x4x1xf32, #tpu.memory_space<vmem>>, vector<1x4x1xf32>
    %230 = vector.shape_cast %229 : vector<1x4x1xf32> to vector<4x1xf32>
    %231 = vector.broadcast %230 : vector<4x1xf32> to vector<4x128xf32>
    %232 = arith.addf %228, %231 : vector<4x128xf32>
    %cst_85 = arith.constant 0.000000e+00 : f32
    %233 = vector.broadcast %cst_85 : f32 to vector<4x128xf32>
    %234 = arith.maximumf %232, %233 : vector<4x128xf32>
    %c22 = arith.constant 22 : index
    %c0_86 = arith.constant 0 : index
    %c0_87 = arith.constant 0 : index
    %235 = vector.load %arg3[%c22, %c0_86, %c0_87] : memref<27x4x1xf32, #tpu.memory_space<vmem>>, vector<1x4x1xf32>
    %236 = vector.shape_cast %235 : vector<1x4x1xf32> to vector<4x1xf32>
    %237 = vector.broadcast %236 : vector<4x1xf32> to vector<4x128xf32>
    %238 = arith.mulf %234, %237 : vector<4x128xf32>
    %c9_i32_88 = arith.constant 9 : i32
    %239 = tpu.dynamic_rotate %234 by %c9_i32_88 dim 1 : vector<4x128xf32>, i32 -> vector<4x128xf32>
    %240 = vector.extract_strided_slice %8 {offsets = [0, 0], sizes = [1, 128], strides = [1, 1]} : vector<8x128xf32> to vector<1x128xf32>
    %241 = vector.broadcast %240 : vector<1x128xf32> to vector<4x128xf32>
    %242 = arith.mulf %239, %241 : vector<4x128xf32>
    %c18 = arith.constant 18 : index
    %c0_89 = arith.constant 0 : index
    %c0_90 = arith.constant 0 : index
    %243 = vector.load %arg3[%c18, %c0_89, %c0_90] : memref<27x4x1xf32, #tpu.memory_space<vmem>>, vector<1x4x1xf32>
    %244 = vector.shape_cast %243 : vector<1x4x1xf32> to vector<4x1xf32>
    %245 = vector.broadcast %244 : vector<4x1xf32> to vector<4x128xf32>
    %246 = arith.mulf %242, %245 : vector<4x128xf32>
    %247 = arith.addf %238, %246 : vector<4x128xf32>
    %c8_i32_91 = arith.constant 8 : i32
    %248 = tpu.dynamic_rotate %234 by %c8_i32_91 dim 1 : vector<4x128xf32>, i32 -> vector<4x128xf32>
    %249 = vector.extract_strided_slice %8 {offsets = [1, 0], sizes = [1, 128], strides = [1, 1]} : vector<8x128xf32> to vector<1x128xf32>
    %250 = vector.broadcast %249 : vector<1x128xf32> to vector<4x128xf32>
    %251 = arith.mulf %248, %250 : vector<4x128xf32>
    %c19 = arith.constant 19 : index
    %c0_92 = arith.constant 0 : index
    %c0_93 = arith.constant 0 : index
    %252 = vector.load %arg3[%c19, %c0_92, %c0_93] : memref<27x4x1xf32, #tpu.memory_space<vmem>>, vector<1x4x1xf32>
    %253 = vector.shape_cast %252 : vector<1x4x1xf32> to vector<4x1xf32>
    %254 = vector.broadcast %253 : vector<4x1xf32> to vector<4x128xf32>
    %255 = arith.mulf %251, %254 : vector<4x128xf32>
    %256 = arith.addf %247, %255 : vector<4x128xf32>
    %c7_i32_94 = arith.constant 7 : i32
    %257 = tpu.dynamic_rotate %234 by %c7_i32_94 dim 1 : vector<4x128xf32>, i32 -> vector<4x128xf32>
    %258 = vector.extract_strided_slice %8 {offsets = [2, 0], sizes = [1, 128], strides = [1, 1]} : vector<8x128xf32> to vector<1x128xf32>
    %259 = vector.broadcast %258 : vector<1x128xf32> to vector<4x128xf32>
    %260 = arith.mulf %257, %259 : vector<4x128xf32>
    %c20 = arith.constant 20 : index
    %c0_95 = arith.constant 0 : index
    %c0_96 = arith.constant 0 : index
    %261 = vector.load %arg3[%c20, %c0_95, %c0_96] : memref<27x4x1xf32, #tpu.memory_space<vmem>>, vector<1x4x1xf32>
    %262 = vector.shape_cast %261 : vector<1x4x1xf32> to vector<4x1xf32>
    %263 = vector.broadcast %262 : vector<4x1xf32> to vector<4x128xf32>
    %264 = arith.mulf %260, %263 : vector<4x128xf32>
    %265 = arith.addf %256, %264 : vector<4x128xf32>
    %c1_i32_97 = arith.constant 1 : i32
    %266 = tpu.dynamic_rotate %234 by %c1_i32_97 dim 1 : vector<4x128xf32>, i32 -> vector<4x128xf32>
    %267 = vector.extract_strided_slice %8 {offsets = [3, 0], sizes = [1, 128], strides = [1, 1]} : vector<8x128xf32> to vector<1x128xf32>
    %268 = vector.broadcast %267 : vector<1x128xf32> to vector<4x128xf32>
    %269 = arith.mulf %266, %268 : vector<4x128xf32>
    %c21 = arith.constant 21 : index
    %c0_98 = arith.constant 0 : index
    %c0_99 = arith.constant 0 : index
    %270 = vector.load %arg3[%c21, %c0_98, %c0_99] : memref<27x4x1xf32, #tpu.memory_space<vmem>>, vector<1x4x1xf32>
    %271 = vector.shape_cast %270 : vector<1x4x1xf32> to vector<4x1xf32>
    %272 = vector.broadcast %271 : vector<4x1xf32> to vector<4x128xf32>
    %273 = arith.mulf %269, %272 : vector<4x128xf32>
    %274 = arith.addf %265, %273 : vector<4x128xf32>
    %c127_i32_100 = arith.constant 127 : i32
    %275 = tpu.dynamic_rotate %234 by %c127_i32_100 dim 1 : vector<4x128xf32>, i32 -> vector<4x128xf32>
    %276 = vector.extract_strided_slice %8 {offsets = [4, 0], sizes = [1, 128], strides = [1, 1]} : vector<8x128xf32> to vector<1x128xf32>
    %277 = vector.broadcast %276 : vector<1x128xf32> to vector<4x128xf32>
    %278 = arith.mulf %275, %277 : vector<4x128xf32>
    %c23 = arith.constant 23 : index
    %c0_101 = arith.constant 0 : index
    %c0_102 = arith.constant 0 : index
    %279 = vector.load %arg3[%c23, %c0_101, %c0_102] : memref<27x4x1xf32, #tpu.memory_space<vmem>>, vector<1x4x1xf32>
    %280 = vector.shape_cast %279 : vector<1x4x1xf32> to vector<4x1xf32>
    %281 = vector.broadcast %280 : vector<4x1xf32> to vector<4x128xf32>
    %282 = arith.mulf %278, %281 : vector<4x128xf32>
    %283 = arith.addf %274, %282 : vector<4x128xf32>
    %c121_i32_103 = arith.constant 121 : i32
    %284 = tpu.dynamic_rotate %234 by %c121_i32_103 dim 1 : vector<4x128xf32>, i32 -> vector<4x128xf32>
    %285 = vector.extract_strided_slice %8 {offsets = [5, 0], sizes = [1, 128], strides = [1, 1]} : vector<8x128xf32> to vector<1x128xf32>
    %286 = vector.broadcast %285 : vector<1x128xf32> to vector<4x128xf32>
    %287 = arith.mulf %284, %286 : vector<4x128xf32>
    %c24 = arith.constant 24 : index
    %c0_104 = arith.constant 0 : index
    %c0_105 = arith.constant 0 : index
    %288 = vector.load %arg3[%c24, %c0_104, %c0_105] : memref<27x4x1xf32, #tpu.memory_space<vmem>>, vector<1x4x1xf32>
    %289 = vector.shape_cast %288 : vector<1x4x1xf32> to vector<4x1xf32>
    %290 = vector.broadcast %289 : vector<4x1xf32> to vector<4x128xf32>
    %291 = arith.mulf %287, %290 : vector<4x128xf32>
    %292 = arith.addf %283, %291 : vector<4x128xf32>
    %c120_i32_106 = arith.constant 120 : i32
    %293 = tpu.dynamic_rotate %234 by %c120_i32_106 dim 1 : vector<4x128xf32>, i32 -> vector<4x128xf32>
    %294 = vector.extract_strided_slice %8 {offsets = [6, 0], sizes = [1, 128], strides = [1, 1]} : vector<8x128xf32> to vector<1x128xf32>
    %295 = vector.broadcast %294 : vector<1x128xf32> to vector<4x128xf32>
    %296 = arith.mulf %293, %295 : vector<4x128xf32>
    %c25 = arith.constant 25 : index
    %c0_107 = arith.constant 0 : index
    %c0_108 = arith.constant 0 : index
    %297 = vector.load %arg3[%c25, %c0_107, %c0_108] : memref<27x4x1xf32, #tpu.memory_space<vmem>>, vector<1x4x1xf32>
    %298 = vector.shape_cast %297 : vector<1x4x1xf32> to vector<4x1xf32>
    %299 = vector.broadcast %298 : vector<4x1xf32> to vector<4x128xf32>
    %300 = arith.mulf %296, %299 : vector<4x128xf32>
    %301 = arith.addf %292, %300 : vector<4x128xf32>
    %c119_i32_109 = arith.constant 119 : i32
    %302 = tpu.dynamic_rotate %234 by %c119_i32_109 dim 1 : vector<4x128xf32>, i32 -> vector<4x128xf32>
    %303 = vector.extract_strided_slice %8 {offsets = [7, 0], sizes = [1, 128], strides = [1, 1]} : vector<8x128xf32> to vector<1x128xf32>
    %304 = vector.broadcast %303 : vector<1x128xf32> to vector<4x128xf32>
    %305 = arith.mulf %302, %304 : vector<4x128xf32>
    %c26 = arith.constant 26 : index
    %c0_110 = arith.constant 0 : index
    %c0_111 = arith.constant 0 : index
    %306 = vector.load %arg3[%c26, %c0_110, %c0_111] : memref<27x4x1xf32, #tpu.memory_space<vmem>>, vector<1x4x1xf32>
    %307 = vector.shape_cast %306 : vector<1x4x1xf32> to vector<4x1xf32>
    %308 = vector.broadcast %307 : vector<4x1xf32> to vector<4x128xf32>
    %309 = arith.mulf %305, %308 : vector<4x128xf32>
    %310 = arith.addf %301, %309 : vector<4x128xf32>
    %c2_112 = arith.constant 2 : index
    %c0_113 = arith.constant 0 : index
    %c0_114 = arith.constant 0 : index
    %311 = vector.load %arg4[%c2_112, %c0_113, %c0_114] : memref<3x4x1xf32, #tpu.memory_space<vmem>>, vector<1x4x1xf32>
    %312 = vector.shape_cast %311 : vector<1x4x1xf32> to vector<4x1xf32>
    %313 = vector.broadcast %312 : vector<4x1xf32> to vector<4x128xf32>
    %314 = arith.addf %310, %313 : vector<4x128xf32>
    %315 = vector.extract_strided_slice %314 {offsets = [0, 0], sizes = [1, 128], strides = [1, 1]} : vector<4x128xf32> to vector<1x128xf32>
    %c8_115 = arith.constant 8 : index
    %c0_116 = arith.constant 0 : index
    %c0_117 = arith.constant 0 : index
    %316 = vector.load %arg5[%c8_115, %c0_116, %c0_117] : memref<12x4x1xf32, #tpu.memory_space<vmem>>, vector<1x4x1xf32>
    %317 = vector.shape_cast %316 : vector<1x4x1xf32> to vector<4x1xf32>
    %318 = vector.broadcast %315 : vector<1x128xf32> to vector<4x128xf32>
    %319 = vector.broadcast %317 : vector<4x1xf32> to vector<4x128xf32>
    %320 = arith.mulf %318, %319 : vector<4x128xf32>
    %321 = vector.extract_strided_slice %314 {offsets = [1, 0], sizes = [1, 128], strides = [1, 1]} : vector<4x128xf32> to vector<1x128xf32>
    %c9_118 = arith.constant 9 : index
    %c0_119 = arith.constant 0 : index
    %c0_120 = arith.constant 0 : index
    %322 = vector.load %arg5[%c9_118, %c0_119, %c0_120] : memref<12x4x1xf32, #tpu.memory_space<vmem>>, vector<1x4x1xf32>
    %323 = vector.shape_cast %322 : vector<1x4x1xf32> to vector<4x1xf32>
    %324 = vector.broadcast %321 : vector<1x128xf32> to vector<4x128xf32>
    %325 = vector.broadcast %323 : vector<4x1xf32> to vector<4x128xf32>
    %326 = arith.mulf %324, %325 : vector<4x128xf32>
    %327 = arith.addf %320, %326 : vector<4x128xf32>
    %328 = vector.extract_strided_slice %314 {offsets = [2, 0], sizes = [1, 128], strides = [1, 1]} : vector<4x128xf32> to vector<1x128xf32>
    %c10_121 = arith.constant 10 : index
    %c0_122 = arith.constant 0 : index
    %c0_123 = arith.constant 0 : index
    %329 = vector.load %arg5[%c10_121, %c0_122, %c0_123] : memref<12x4x1xf32, #tpu.memory_space<vmem>>, vector<1x4x1xf32>
    %330 = vector.shape_cast %329 : vector<1x4x1xf32> to vector<4x1xf32>
    %331 = vector.broadcast %328 : vector<1x128xf32> to vector<4x128xf32>
    %332 = vector.broadcast %330 : vector<4x1xf32> to vector<4x128xf32>
    %333 = arith.mulf %331, %332 : vector<4x128xf32>
    %334 = arith.addf %327, %333 : vector<4x128xf32>
    %335 = vector.extract_strided_slice %314 {offsets = [3, 0], sizes = [1, 128], strides = [1, 1]} : vector<4x128xf32> to vector<1x128xf32>
    %c11_124 = arith.constant 11 : index
    %c0_125 = arith.constant 0 : index
    %c0_126 = arith.constant 0 : index
    %336 = vector.load %arg5[%c11_124, %c0_125, %c0_126] : memref<12x4x1xf32, #tpu.memory_space<vmem>>, vector<1x4x1xf32>
    %337 = vector.shape_cast %336 : vector<1x4x1xf32> to vector<4x1xf32>
    %338 = vector.broadcast %335 : vector<1x128xf32> to vector<4x128xf32>
    %339 = vector.broadcast %337 : vector<4x1xf32> to vector<4x128xf32>
    %340 = arith.mulf %338, %339 : vector<4x128xf32>
    %341 = arith.addf %334, %340 : vector<4x128xf32>
    %c2_127 = arith.constant 2 : index
    %c0_128 = arith.constant 0 : index
    %c0_129 = arith.constant 0 : index
    %342 = vector.load %arg6[%c2_127, %c0_128, %c0_129] : memref<3x4x1xf32, #tpu.memory_space<vmem>>, vector<1x4x1xf32>
    %343 = vector.shape_cast %342 : vector<1x4x1xf32> to vector<4x1xf32>
    %344 = vector.broadcast %343 : vector<4x1xf32> to vector<4x128xf32>
    %345 = arith.addf %341, %344 : vector<4x128xf32>
    %cst_130 = arith.constant 0.000000e+00 : f32
    %346 = vector.broadcast %cst_130 : f32 to vector<4x128xf32>
    %347 = arith.maximumf %345, %346 : vector<4x128xf32>
    %348 = vector.extract_strided_slice %347 {offsets = [0, 0], sizes = [1, 128], strides = [1, 1]} : vector<4x128xf32> to vector<1x128xf32>
    %c0_131 = arith.constant 0 : index
    %c0_132 = arith.constant 0 : index
    %c0_133 = arith.constant 0 : index
    %349 = vector.load %arg7[%c0_131, %c0_132, %c0_133] : memref<4x8x1xf32, #tpu.memory_space<vmem>>, vector<1x8x1xf32>
    %350 = vector.shape_cast %349 : vector<1x8x1xf32> to vector<8x1xf32>
    %351 = vector.broadcast %348 : vector<1x128xf32> to vector<8x128xf32>
    %352 = vector.broadcast %350 : vector<8x1xf32> to vector<8x128xf32>
    %353 = arith.mulf %351, %352 : vector<8x128xf32>
    %354 = vector.extract_strided_slice %347 {offsets = [1, 0], sizes = [1, 128], strides = [1, 1]} : vector<4x128xf32> to vector<1x128xf32>
    %c1_134 = arith.constant 1 : index
    %c0_135 = arith.constant 0 : index
    %c0_136 = arith.constant 0 : index
    %355 = vector.load %arg7[%c1_134, %c0_135, %c0_136] : memref<4x8x1xf32, #tpu.memory_space<vmem>>, vector<1x8x1xf32>
    %356 = vector.shape_cast %355 : vector<1x8x1xf32> to vector<8x1xf32>
    %357 = vector.broadcast %354 : vector<1x128xf32> to vector<8x128xf32>
    %358 = vector.broadcast %356 : vector<8x1xf32> to vector<8x128xf32>
    %359 = arith.mulf %357, %358 : vector<8x128xf32>
    %360 = arith.addf %353, %359 : vector<8x128xf32>
    %361 = vector.extract_strided_slice %347 {offsets = [2, 0], sizes = [1, 128], strides = [1, 1]} : vector<4x128xf32> to vector<1x128xf32>
    %c2_137 = arith.constant 2 : index
    %c0_138 = arith.constant 0 : index
    %c0_139 = arith.constant 0 : index
    %362 = vector.load %arg7[%c2_137, %c0_138, %c0_139] : memref<4x8x1xf32, #tpu.memory_space<vmem>>, vector<1x8x1xf32>
    %363 = vector.shape_cast %362 : vector<1x8x1xf32> to vector<8x1xf32>
    %364 = vector.broadcast %361 : vector<1x128xf32> to vector<8x128xf32>
    %365 = vector.broadcast %363 : vector<8x1xf32> to vector<8x128xf32>
    %366 = arith.mulf %364, %365 : vector<8x128xf32>
    %367 = arith.addf %360, %366 : vector<8x128xf32>
    %368 = vector.extract_strided_slice %347 {offsets = [3, 0], sizes = [1, 128], strides = [1, 1]} : vector<4x128xf32> to vector<1x128xf32>
    %c3_140 = arith.constant 3 : index
    %c0_141 = arith.constant 0 : index
    %c0_142 = arith.constant 0 : index
    %369 = vector.load %arg7[%c3_140, %c0_141, %c0_142] : memref<4x8x1xf32, #tpu.memory_space<vmem>>, vector<1x8x1xf32>
    %370 = vector.shape_cast %369 : vector<1x8x1xf32> to vector<8x1xf32>
    %371 = vector.broadcast %368 : vector<1x128xf32> to vector<8x128xf32>
    %372 = vector.broadcast %370 : vector<8x1xf32> to vector<8x128xf32>
    %373 = arith.mulf %371, %372 : vector<8x128xf32>
    %374 = arith.addf %367, %373 : vector<8x128xf32>
    %c0_143 = arith.constant 0 : index
    %c0_144 = arith.constant 0 : index
    %375 = vector.load %arg8[%c0_143, %c0_144] : memref<8x1xf32, #tpu.memory_space<vmem>>, vector<8x1xf32>
    %376 = vector.broadcast %375 : vector<8x1xf32> to vector<8x128xf32>
    %377 = arith.addf %374, %376 : vector<8x128xf32>
    %c0_145 = arith.constant 0 : index
    %c0_146 = arith.constant 0 : index
    %c0_147 = arith.constant 0 : index
    %378 = vector.load %arg9[%c0_145, %c0_146, %c0_147] : memref<1x8x128xf32, #tpu.memory_space<vmem>>, vector<1x8x128xf32>
    %379 = vector.shape_cast %378 : vector<1x8x128xf32> to vector<8x128xf32>
    %380 = vector.shape_cast %377 : vector<8x128xf32> to vector<1x8x128xf32>
    tpu.vector_store %arg9[%c0_145, %c0_146, %c0_147], %380 {strides = array<i32>} : memref<1x8x128xf32, #tpu.memory_space<vmem>>, vector<1x8x128xf32>,
    return
  }
  func.func @transform_0(%arg0: i32) -> (i32, i32, i32) {
    %c0_i32 = arith.constant 0 : i32
    %c0_i32_0 = arith.constant 0 : i32
    %c0_i32_1 = arith.constant 0 : i32
    return %arg0, %c0_i32, %c0_i32_0 : i32, i32, i32
  }
  func.func @transform_1(%arg0: i32) -> (i32, i32) {
    %c0_i32 = arith.constant 0 : i32
    %c0_i32_0 = arith.constant 0 : i32
    %c0_i32_1 = arith.constant 0 : i32
    return %c0_i32, %c0_i32_0 : i32, i32
  }
  func.func @transform_2(%arg0: i32) -> (i32, i32, i32) {
    %c0_i32 = arith.constant 0 : i32
    %c0_i32_0 = arith.constant 0 : i32
    %c0_i32_1 = arith.constant 0 : i32
    %c0_i32_2 = arith.constant 0 : i32
    return %c0_i32, %c0_i32_0, %c0_i32_1 : i32, i32, i32
  }
  func.func @transform_3(%arg0: i32) -> (i32, i32, i32) {
    %c0_i32 = arith.constant 0 : i32
    %c0_i32_0 = arith.constant 0 : i32
    %c0_i32_1 = arith.constant 0 : i32
    %c0_i32_2 = arith.constant 0 : i32
    return %c0_i32, %c0_i32_0, %c0_i32_1 : i32, i32, i32
  }
  func.func @transform_4(%arg0: i32) -> (i32, i32, i32) {
    %c0_i32 = arith.constant 0 : i32
    %c0_i32_0 = arith.constant 0 : i32
    %c0_i32_1 = arith.constant 0 : i32
    %c0_i32_2 = arith.constant 0 : i32
    return %c0_i32, %c0_i32_0, %c0_i32_1 : i32, i32, i32
  }
  func.func @transform_5(%arg0: i32) -> (i32, i32, i32) {
    %c0_i32 = arith.constant 0 : i32
    %c0_i32_0 = arith.constant 0 : i32
    %c0_i32_1 = arith.constant 0 : i32
    %c0_i32_2 = arith.constant 0 : i32
    return %c0_i32, %c0_i32_0, %c0_i32_1 : i32, i32, i32
  }
  func.func @transform_6(%arg0: i32) -> (i32, i32, i32) {
    %c0_i32 = arith.constant 0 : i32
    %c0_i32_0 = arith.constant 0 : i32
    %c0_i32_1 = arith.constant 0 : i32
    %c0_i32_2 = arith.constant 0 : i32
    return %c0_i32, %c0_i32_0, %c0_i32_1 : i32, i32, i32
  }
  func.func @transform_7(%arg0: i32) -> (i32, i32) {
    %c0_i32 = arith.constant 0 : i32
    %c0_i32_0 = arith.constant 0 : i32
    %c0_i32_1 = arith.constant 0 : i32
    return %c0_i32, %c0_i32_0 : i32, i32
  }
  func.func @transform_8(%arg0: i32) -> (i32, i32, i32) {
    %c0_i32 = arith.constant 0 : i32
    %c0_i32_0 = arith.constant 0 : i32
    %c0_i32_1 = arith.constant 0 : i32
    return %arg0, %c0_i32, %c0_i32_0 : i32, i32, i32
  }
}

</mosaic_0001>

<bundles_post_ra>
// kernel: tpu_custom_call.1
= control target key start
LH: loop header
LB: loop body
LE: loop exit
PB: predicated region body
PF: predicated region fallthrough
CT: control target
= control target key end

     0   :  { %v734_v3 = vmov 0   ;;  %s1063_s0 = inlined_call_operand.vmem [shape: f32[1,16,128], index: 0, kind: input, shape index: {}]   ;;  %s1064_s1 = inlined_call_operand.vmem [shape: f32[8,128], index: 1, kind: input, shape index: {}]   ;;  %s1065_s2 = inlined_call_operand.vmem [shape: f32[27,4,1], index: 2, kind: input, shape index: {}]   ;;  %s1066_s3 = inlined_call_operand.vmem [shape: f32[3,4,1], index: 3, kind: input, shape index: {}]   ;;  %s1067_s4 = inlined_call_operand.vmem [shape: f32[12,4,1], index: 4, kind: input, shape index: {}]   ;;  %s1068_s5 = inlined_call_operand.vmem [shape: f32[3,4,1], index: 5, kind: input, shape index: {}]   ;;  %s1069_s6 = inlined_call_operand.vmem [shape: f32[4,8,1], index: 6, kind: input, shape index: {}]   ;;  %s1070_s7 = inlined_call_operand.vmem [shape: f32[8,1], index: 7, kind: input, shape index: {}]   ;;  %s1071_s8 = inlined_call_operand.hbm [shape: f32[1,8,128], index: 8, kind: output, shape index: {}]  }
   0x1   :  { %v655_v0 = vld [vmem:[%s1065_s2 + $0x4] sm:$0xf]  ;;  %v654_v1 = vld [vmem:[%s1065_s2 + $0x10] sm:$0xf]  ;;  %709 = vset.pattern.permute.xlu1 %v734_v3  ;;  %708 = vset.pattern.permute.xlu0 %v734_v3  ;;  %v31_v4 = vld [vmem:[%s1063_s0 + $0x8] sm:$0xff] }
   0x2   :  { %v30_v2 = vld [vmem:[%s1063_s0] sm:$0xff]  ;;  %72 = vperm.xlu1 %709, %v655_v0   ;;  %42 = vperm.xlu0 %708, %v654_v1   ;;  %v656_v5 = vld [vmem:[%s1065_s2 + $0x8] sm:$0xf]  ;;  %v657_v9 = vld [vmem:[%s1065_s2 + $0xc] sm:$0xf]  ;;  %s735_s0 = smov 9  }
   0x3   :  { %v53_v6 = vld [vmem:[%s1065_s2] sm:$0xf]  ;;  %v32_v7 = vmax.f32 %v30_v2, %v31_v4  ;;  %v658_v11 = vld [vmem:[%s1065_s2 + $0x14] sm:$0xf] }
   0x5   :  { %v34_v8 = vrot.slane %v32_v7, 4 }
   0x6   :  { %88 = vperm.xlu1 %709, %v656_v5   ;;  %56 = vperm.xlu0 %708, %v53_v6  }
   0x7   :  { %v810_v10 = vmax.f32 %v32_v7, %v34_v8 }
   0xa   :  { %104 = vperm.xlu1 %709, %v657_v9   ;;  %46 = vrot.lane.b32.xlu0 %v810_v10, %s735_s0 }
   0xb   :  { %13 = vsyncpa [#allocation3], 0  ;;  %s736_s21 = smov 8   ;;  %v659_v12 = vld [vmem:[%s1065_s2 + $0x18] sm:$0xf]  ;;  %s737_s24 = smov 7   ;;  %v48_v30 = vlaneseq }
   0xc   :  { %v660_v13 = vld [vmem:[%s1065_s2 + $0x1c] sm:$0xf]  ;;  %s738_s27 = smov 1   ;;  %v661_v14 = vld [vmem:[%s1065_s2 + $0x20] sm:$0xf]  ;;  %s739_s30 = smov 127  }
   0xd   :  { %s740_s9 = smov 120   ;;  %s741_s10 = smov 121   ;;  %v173_v15 = vld [vmem:[%s1066_s3] sm:$0xf]  ;;  %v662_v16 = vld [vmem:[%s1067_s4 + $0x4] sm:$0xf] }
   0xe   :  { %120 = vperm.xlu1 %709, %v658_v11   ;;  %61 = vrot.lane.b32.xlu0 %v810_v10, %s736_s21  ;;  %s742_s13 = smov 119   ;;  %v180_v17 = vld [vmem:[%s1067_s4] sm:$0xf]  ;;  %v664_v18 = vld [vmem:[%s1067_s4 + $0xc] sm:$0xf]  ;;  %v49_v33 = vshrl.u32 %v48_v30, 7 }
   0xf   :  { %v663_v19 = vld [vmem:[%s1067_s4 + $0x8] sm:$0xf]  ;;  %v665_v20 = vld [vmem:[%s1065_s2 + $0x34] sm:$0xf]  ;;  %v230_v21 = vld [vmem:[%s1068_s5] sm:$0xf] }
  0x10   :  { %v667_v22 = vld [vmem:[%s1065_s2 + $0x28] sm:$0xf]  ;;  %v666_v23 = vld [vmem:[%s1065_s2 + $0x24] sm:$0xf]  ;;  %v668_v24 = vld [vmem:[%s1065_s2 + $0x2c] sm:$0xf] }
  0x11   :  { %v669_v25 = vld [vmem:[%s1065_s2 + $0x30] sm:$0xf]  ;;  %v670_v26 = vld [vmem:[%s1065_s2 + $0x38] sm:$0xf]  ;;  %v671_v27 = vld [vmem:[%s1065_s2 + $0x3c] sm:$0xf] }
  0x12   :  { %136 = vperm.xlu1 %709, %v659_v12   ;;  %77 = vrot.lane.b32.xlu0 %v810_v10, %s737_s24  ;;  %v672_v28 = vld [vmem:[%s1065_s2 + $0x40] sm:$0xf]  ;;  %v673_v29 = vld [vmem:[%s1065_s2 + $0x44] sm:$0xf]  ;;  %v885_v36 = vsub.s32 0, %v49_v33  ;;  %v890_v40 = vsub.s32 1, %v49_v33 }
  0x13   :  { %v37_v38 = vld [vmem:[%s1064_s1] sm:$0xff]  ;;  %v895_v42 = vsub.s32 2, %v49_v33  ;;  %v900_v46 = vsub.s32 3, %v49_v33  ;;  %v113_v53 = vsub.s32 4, %v49_v33  ;;  %v145_v58 = vsub.s32 6, %v49_v33 }
  0x14   :  { %v893_v41 = vrot.slane %v37_v38, %v885_v36  ;;  %v898_v45 = vrot.slane %v37_v38, %v890_v40  ;;  %v129_v59 = vsub.s32 5, %v49_v33  ;;  %v161_v9 = vsub.s32 7, %v49_v33 }
  0x15   :  { %v904_v48 = vrot.slane %v37_v38, %v895_v42  ;;  %v908_v52 = vrot.slane %v37_v38, %v900_v46  ;;  %v913_v63 = vrot.slane %v37_v38, %v113_v53  ;;  %v915_v4 = vrot.slane %v37_v38, %v145_v58  ;;  %v682_v58 = vld [vmem:[%s1065_s2 + $0x4c] sm:$0xf] }
  0x16   :  { %152 = vperm.xlu1 %709, %v660_v13   ;;  %93 = vrot.lane.b32.xlu0 %v810_v10, %s738_s27  ;;  %v917_v5 = vrot.slane %v37_v38, %v129_v59  ;;  %v674_v59 = vld [vmem:[%s1066_s3 + $0x4] sm:$0xf] }
  0x1a   :  { %168 = vperm.xlu1 %709, %v661_v14   ;;  %109 = vrot.lane.b32.xlu0 %v810_v10, %s739_s30 }
  0x1e   :  { %141 = vrot.lane.b32.xlu1 %v810_v10, %s740_s9  ;;  %125 = vrot.lane.b32.xlu0 %v810_v10, %s741_s10 }
  0x22   :  { %157 = vrot.lane.b32.xlu1 %v810_v10, %s742_s13  ;;  %176 = vperm.xlu0 %708, %v173_v15  }
  0x26   :  { %199 = vperm.xlu1 %709, %v662_v16   ;;  %187 = vperm.xlu0 %708, %v180_v17   ;;  %v922_v17 = vrot.slane %v37_v38, %v161_v9 }
  0x2a   :  { %225 = vperm.xlu1 %709, %v664_v18   ;;  %212 = vperm.xlu0 %708, %v663_v19  }
  0x2e   :  { %242 = vperm.xlu1 %709, %v665_v20   ;;  %233 = vperm.xlu0 %708, %v230_v21  }
  0x32   :  { %265 = vperm.xlu1 %709, %v667_v22   ;;  %253 = vperm.xlu0 %708, %v666_v23  }
  0x36   :  { %277 = vperm.xlu0 %708, %v668_v24  }
  0x3a   :  { %289 = vperm.xlu0 %708, %v669_v25  }
  0x3e   :  { %301 = vperm.xlu0 %708, %v670_v26  }
  0x42   :  { %313 = vperm.xlu0 %708, %v671_v27  }
  0x46   :  { %325 = vperm.xlu0 %708, %v672_v28  }
  0x4a   :  { %337 = vperm.xlu0 %708, %v673_v29  }
  0x81   :  { %v73_v31 = vpop.permute.xlu1 %72  ;;  %v43_v32 = vpop.permute.xlu0 %42 }
  0x82   :  { %v45_v60 = vmul.f32 %v43_v32, %v810_v10 }
  0x85   :  { %v89_v34 = vpop.permute.xlu1 %88  ;;  %v57_v35 = vpop.permute.xlu0 %56 }
  0x89   :  { %v105_v37 = vpop.permute.xlu1 %104  ;;  %v47_v39 = vpop.permute.xlu0 %46 }
  0x8a   :  { %v52_v47 = vmul.f32 %v893_v41, %v47_v39 }
  0x8c   :  { %v59_v54 = vmul.f32 %v57_v35, %v52_v47 }
  0x8d   :  { %v121_v43 = vpop.permute.xlu1 %120  ;;  %v62_v44 = vpop.permute.xlu0 %61 }
  0x8e   :  { %v67_v51 = vmul.f32 %v898_v45, %v62_v44  ;;  %v60_v0 = vadd.f32 %v59_v54, %v45_v60  ;;  %v675_v60 = vld [vmem:[%s1067_s4 + $0x10] sm:$0xf] }
  0x90   :  { %v75_v61 = vmul.f32 %v73_v31, %v67_v51 }
  0x91   :  { %v137_v49 = vpop.permute.xlu1 %136  ;;  %v78_v50 = vpop.permute.xlu0 %77 }
  0x92   :  { %v83_v55 = vmul.f32 %v904_v48, %v78_v50  ;;  %v76_v6 = vadd.f32 %v75_v61, %v60_v0  ;;  %v677_v61 = vld [vmem:[%s1067_s4 + $0x18] sm:$0xf]  ;;  %v681_v0 = vld [vmem:[%s1065_s2 + $0x48] sm:$0xf] }
  0x94   :  { %v91_v1 = vmul.f32 %v89_v34, %v83_v55  ;;  %v676_v55 = vld [vmem:[%s1067_s4 + $0x14] sm:$0xf] }
  0x95   :  { %v153_v56 = vpop.permute.xlu1 %152  ;;  %v94_v57 = vpop.permute.xlu0 %93 }
  0x96   :  { %v99_v62 = vmul.f32 %v908_v52, %v94_v57  ;;  %v92_v11 = vadd.f32 %v91_v1, %v76_v6  ;;  %v680_v57 = vld [vmem:[%s1065_s2 + $0x58] sm:$0xf]  ;;  %v683_v1 = vld [vmem:[%s1065_s2 + $0x50] sm:$0xf]  ;;  %v686_v6 = vld [vmem:[%s1065_s2 + $0x60] sm:$0xf] }
  0x98   :  { %v107_v7 = vmul.f32 %v105_v37, %v99_v62  ;;  %v679_v62 = vld [vmem:[%s1068_s5 + $0x4] sm:$0xf] }
  0x99   :  { %v169_v2 = vpop.permute.xlu1 %168  ;;  %v110_v3 = vpop.permute.xlu0 %109 }
  0x9a   :  { %v115_v8 = vmul.f32 %v913_v63, %v110_v3  ;;  %v108_v14 = vadd.f32 %v107_v7, %v92_v11  ;;  %v685_v3 = vld [vmem:[%s1065_s2 + $0x5c] sm:$0xf]  ;;  %v687_v7 = vld [vmem:[%s1065_s2 + $0x64] sm:$0xf] }
  0x9c   :  { %v123_v10 = vmul.f32 %v121_v43, %v115_v8  ;;  %v688_v8 = vld [vmem:[%s1065_s2 + $0x68] sm:$0xf] }
  0x9d   :  { %v142_v12 = vpop.permute.xlu1 %141  ;;  %v126_v13 = vpop.permute.xlu0 %125 }
  0x9e   :  { %v147_v15 = vmul.f32 %v915_v4, %v142_v12  ;;  %v131_v16 = vmul.f32 %v917_v5, %v126_v13  ;;  %v124_v18 = vadd.f32 %v123_v10, %v108_v14 }
  0xa0   :  { %v139_v19 = vmul.f32 %v137_v49, %v131_v16  ;;  %v155_v22 = vmul.f32 %v153_v56, %v147_v15  ;;  %v678_v56 = vld [vmem:[%s1067_s4 + $0x1c] sm:$0xf] }
  0xa1   :  { %v158_v20 = vpop.permute.xlu1 %157  ;;  %v177_v21 = vpop.permute.xlu0 %176 }
  0xa2   :  { %v140_v23 = vadd.f32 %v139_v19, %v124_v18  ;;  %v163_v24 = vmul.f32 %v922_v17, %v158_v20 }
  0xa4   :  { %v171_v25 = vmul.f32 %v169_v2, %v163_v24  ;;  %v156_v26 = vadd.f32 %v155_v22, %v140_v23  ;;  %v684_v2 = vld [vmem:[%s1065_s2 + $0x54] sm:$0xf] }
  0xa5   :  { %v188_v28 = vpop.permute.xlu0 %187  ;;  %v200_v30 = vpop.permute.xlu1 %199 }
  0xa6   :  { %v172_v27 = vadd.f32 %v171_v25, %v156_v26 }
  0xa8   :  { %v179_v29 = vadd.f32 %v177_v21, %v172_v27 }
  0xa9   :  { %v213_v38 = vpop.permute.xlu0 %212  ;;  %v226_v44 = vpop.permute.xlu1 %225 }
  0xaa   :  { %v196_v31 = vrot.slane %v179_v29, %v890_v40  ;;  %v184_v32 = vrot.slane %v179_v29, %v885_v36  ;;  %v209_v33 = vrot.slane %v179_v29, %v895_v42  ;;  %v222_v37 = vrot.slane %v179_v29, %v900_v46 }
  0xac   :  { %v202_v34 = vmul.f32 %v200_v30, %v196_v31  ;;  %v190_v35 = vmul.f32 %v188_v28, %v184_v32  ;;  %v215_v43 = vmul.f32 %v213_v38, %v209_v33  ;;  %v228_v47 = vmul.f32 %v226_v44, %v222_v37 }
  0xad   :  { %v234_v51 = vpop.permute.xlu0 %233  ;;  %v243_v10 = vpop.permute.xlu1 %242 }
  0xae   :  { %v203_v39 = vadd.f32 %v202_v34, %v190_v35 }
  0xb0   :  { %v216_v49 = vadd.f32 %v215_v43, %v203_v39 }
  0xb1   :  { %v254_v9 = vpop.permute.xlu0 %253  ;;  %v266_v13 = vpop.permute.xlu1 %265 }
  0xb2   :  { %v229_v50 = vadd.f32 %v228_v47, %v216_v49 }
  0xb4   :  { %v236_v53 = vadd.f32 %v234_v51, %v229_v50 }
  0xb5   :  { %v278_v11 = vpop.permute.xlu0 %277 }
  0xb6   :  { %v237_v54 = vmax.f32 %v236_v53, 0.0 }
  0xb8   :  { %318 = vrot.lane.b32.xlu0 %v237_v54, %s740_s9  ;;  %246 = vrot.lane.b32.xlu1 %v237_v54, %s735_s0  ;;  %v245_v26 = vmul.f32 %v243_v10, %v237_v54 }
  0xb9   :  { %v290_v12 = vpop.permute.xlu0 %289 }
  0xbc   :  { %330 = vrot.lane.b32.xlu0 %v237_v54, %s742_s13  ;;  %258 = vrot.lane.b32.xlu1 %v237_v54, %s736_s21 }
  0xbd   :  { %v302_v14 = vpop.permute.xlu0 %301 }
  0xc0   :  { %370 = vperm.xlu0 %708, %v676_v55   ;;  %270 = vrot.lane.b32.xlu1 %v237_v54, %s737_s24 }
  0xc1   :  { %v314_v18 = vpop.permute.xlu0 %313 }
  0xc4   :  { %396 = vperm.xlu0 %708, %v678_v56   ;;  %282 = vrot.lane.b32.xlu1 %v237_v54, %s738_s27 }
  0xc5   :  { %v326_v21 = vpop.permute.xlu0 %325 }
  0xc8   :  { %414 = vperm.xlu0 %708, %v680_v57   ;;  %294 = vrot.lane.b32.xlu1 %v237_v54, %s739_s30 }
  0xc9   :  { %v338_v30 = vpop.permute.xlu0 %337 }
  0xcc   :  { %437 = vperm.xlu0 %708, %v682_v58   ;;  %306 = vrot.lane.b32.xlu1 %v237_v54, %s741_s10 }
  0xd0   :  { %346 = vperm.xlu1 %709, %v674_v59  }
  0xd4   :  { %358 = vperm.xlu1 %709, %v675_v60  }
  0xd8   :  { %383 = vperm.xlu1 %709, %v677_v61  }
  0xdc   :  { %405 = vperm.xlu1 %709, %v679_v62  }
  0xe0   :  { %425 = vperm.xlu1 %709, %v681_v0  }
  0xe4   :  { %449 = vperm.xlu1 %709, %v683_v1  }
  0xe8   :  { %461 = vperm.xlu1 %709, %v684_v2  }
  0xec   :  { %473 = vperm.xlu1 %709, %v685_v3  }
  0xf0   :  { %485 = vperm.xlu1 %709, %v686_v6  }
  0xf4   :  { %497 = vperm.xlu1 %709, %v687_v7  }
  0xf8   :  { %509 = vperm.xlu1 %709, %v688_v8  }
 0x12a   :  { %v247_v15 = vpop.permute.xlu1 %246  ;;  %v319_v38 = vpop.permute.xlu0 %318 }
 0x12b   :  { %v248_v20 = vmul.f32 %v247_v15, %v893_v41  ;;  %v320_v50 = vmul.f32 %v319_v38, %v915_v4 }
 0x12d   :  { %v256_v24 = vmul.f32 %v254_v9, %v248_v20  ;;  %v328_v55 = vmul.f32 %v326_v21, %v320_v50  ;;  %v691_v20 = vld [vmem:[%s1067_s4 + $0x24] sm:$0xf]  ;;  %v693_v21 = vld [vmem:[%s1067_s4 + $0x2c] sm:$0xf] }
 0x12e   :  { %v259_v16 = vpop.permute.xlu1 %258  ;;  %v331_v53 = vpop.permute.xlu0 %330 }
 0x12f   :  { %v260_v22 = vmul.f32 %v259_v16, %v898_v45  ;;  %v257_v31 = vadd.f32 %v256_v24, %v245_v26  ;;  %v332_v56 = vmul.f32 %v331_v53, %v922_v17  ;;  %v632_v24 = vld [vmem:[%s1070_s7] sm:$0xff] }
 0x130   :  { %v690_v26 = vld [vmem:[%s1067_s4 + $0x20] sm:$0xf] }
 0x131   :  { %v268_v27 = vmul.f32 %v266_v13, %v260_v22  ;;  %v340_v58 = vmul.f32 %v338_v30, %v332_v56  ;;  %v582_v22 = vld [vmem:[%s1069_s6] sm:$0xff]  ;;  %v697_v30 = vld [vmem:[%s1069_s6 + $0x18] sm:$0xff] }
 0x132   :  { %v271_v19 = vpop.permute.xlu1 %270 }
 0x133   :  { %v272_v25 = vmul.f32 %v271_v19, %v904_v48  ;;  %v269_v34 = vadd.f32 %v268_v27, %v257_v31  ;;  %v692_v27 = vld [vmem:[%s1067_s4 + $0x28] sm:$0xf]  ;;  %s743_s4 = smov [#allocation2]  }
 0x135   :  { %v280_v32 = vmul.f32 %v278_v11, %v272_v25  ;;  %v689_v25 = vld [vmem:[%s1066_s3 + $0x8] sm:$0xf] }
 0x136   :  { %v283_v23 = vpop.permute.xlu1 %282 }
 0x137   :  { %v284_v28 = vmul.f32 %v283_v23, %v908_v52  ;;  %v281_v43 = vadd.f32 %v280_v32, %v269_v34  ;;  %v696_v23 = vld [vmem:[%s1069_s6 + $0x10] sm:$0xff] }
 0x139   :  { %v292_v35 = vmul.f32 %v290_v12, %v284_v28  ;;  %v694_v28 = vld [vmem:[%s1068_s5 + $0x8] sm:$0xf]  ;;  %s646_s5 = sshll.u32 %s743_s4, 4  ;;  %s647_s5 = int_to_ptr.vmem [resolvable:$true] %s646_s5 }
 0x13a   :  { %v295_v29 = vpop.permute.xlu1 %294  ;;  %p715_p1 = scmp.lt.s32.totalorder %s647_s5, %s647_s5 }
 0x13b   :  { %v296_v33 = vmul.f32 %v295_v29, %v913_v63  ;;  %v293_v47 = vadd.f32 %v292_v35, %v281_v43  ;;  %v695_v29 = vld [vmem:[%s1069_s6 + $0x8] sm:$0xff]  ;;  %s710_s6 = scalar_lea.vmem %s647_s5, 128 }
 0x13c   :  { %p711_p0 = scmp.ne.s32.totalorder %s647_s5, %s710_s6  ;;  %p716_p2 = scmp.lt.s32.totalorder %s710_s6, %s710_s6 }
 0x13d   :  { %v304_v44 = vmul.f32 %v302_v14, %v296_v33 }
 0x13e   :  { %v307_v37 = vpop.permute.xlu1 %306  ;;  %p717_p3 = por %p716_p2, %p715_p1 }
 0x13f   :  { %v308_v39 = vmul.f32 %v307_v37, %v917_v5  ;;  %v305_v51 = vadd.f32 %v304_v44, %v293_v47  ;;  %v371_v1 = vpop.permute.xlu0 %370 }
 0x140   :  { %p718_p4 = pnand %p717_p3, %p711_p0 }
 0x141   :  { %v316_v49 = vmul.f32 %v314_v18, %v308_v39 }
 0x143   :  { %v317_v54 = vadd.f32 %v316_v49, %v305_v51  ;;  %v397_v12 = vpop.permute.xlu0 %396 }
 0x145   :  { %v329_v57 = vadd.f32 %v328_v55, %v317_v54 }
 0x147   :  { %v341_v59 = vadd.f32 %v340_v58, %v329_v57  ;;  %v415_v33 = vpop.permute.xlu0 %414 }
 0x14b   :  { %v438_v35 = vpop.permute.xlu0 %437 }
 0x14f   :  { %v347_v60 = vpop.permute.xlu1 %346 }
 0x150   :  { %v349_v61 = vadd.f32 %v347_v60, %v341_v59 }
 0x152   :  { %v355_v62 = vrot.slane %v349_v61, %v885_v36  ;;  %v367_v0 = vrot.slane %v349_v61, %v890_v40  ;;  %v380_v7 = vrot.slane %v349_v61, %v895_v42  ;;  %v393_v8 = vrot.slane %v349_v61, %v900_v46 }
 0x153   :  { %v359_v2 = vpop.permute.xlu1 %358 }
 0x154   :  { %v361_v3 = vmul.f32 %v359_v2, %v355_v62  ;;  %v373_v6 = vmul.f32 %v371_v1, %v367_v0  ;;  %v399_v14 = vmul.f32 %v397_v12, %v393_v8 }
 0x156   :  { %v374_v11 = vadd.f32 %v373_v6, %v361_v3 }
 0x157   :  { %v384_v9 = vpop.permute.xlu1 %383 }
 0x158   :  { %v386_v10 = vmul.f32 %v384_v9, %v380_v7 }
 0x15a   :  { %v387_v13 = vadd.f32 %v386_v10, %v374_v11 }
 0x15b   :  { %v406_v16 = vpop.permute.xlu1 %405 }
 0x15c   :  { %v400_v15 = vadd.f32 %v399_v14, %v387_v13 }
 0x15e   :  { %v408_v18 = vadd.f32 %v406_v16, %v400_v15 }
 0x15f   :  { %v426_v31 = vpop.permute.xlu1 %425 }
 0x160   :  { %v409_v19 = vmax.f32 %v408_v18, 0.0 }
 0x162   :  { %490 = vrot.lane.b32.xlu1 %v409_v19, %s740_s9  ;;  %418 = vrot.lane.b32.xlu0 %v409_v19, %s735_s0  ;;  %v417_v55 = vmul.f32 %v415_v33, %v409_v19 }
 0x163   :  { %v450_v32 = vpop.permute.xlu1 %449 }
 0x166   :  { %502 = vrot.lane.b32.xlu1 %v409_v19, %s742_s13  ;;  %430 = vrot.lane.b32.xlu0 %v409_v19, %s736_s21 }
 0x167   :  { %v462_v34 = vpop.permute.xlu1 %461 }
 0x16a   :  { %542 = vperm.xlu1 %709, %v691_v20   ;;  %442 = vrot.lane.b32.xlu0 %v409_v19, %s737_s24 }
 0x16b   :  { %v474_v37 = vpop.permute.xlu1 %473 }
 0x16e   :  { %568 = vperm.xlu1 %709, %v693_v21   ;;  %454 = vrot.lane.b32.xlu0 %v409_v19, %s738_s27 }
 0x16f   :  { %v486_v43 = vpop.permute.xlu1 %485 }
 0x172   :  { %589 = vperm.xlu1 %709, %v582_v22   ;;  %466 = vrot.lane.b32.xlu0 %v409_v19, %s739_s30 }
 0x173   :  { %v498_v49 = vpop.permute.xlu1 %497 }
 0x176   :  { %614 = vperm.xlu1 %709, %v696_v23   ;;  %478 = vrot.lane.b32.xlu0 %v409_v19, %s741_s10 }
 0x177   :  { %v510_v59 = vpop.permute.xlu1 %509 }
 0x17a   :  { %635 = vperm.xlu1 %709, %v632_v24   ;;  %518 = vperm.xlu0 %708, %v689_v25  }
 0x17e   :  { %530 = vperm.xlu0 %708, %v690_v26  }
 0x182   :  { %555 = vperm.xlu0 %708, %v692_v27  }
 0x186   :  { %577 = vperm.xlu0 %708, %v694_v28  }
 0x18a   :  { %601 = vperm.xlu0 %708, %v695_v29  }
 0x18e   :  { %627 = vperm.xlu0 %708, %v697_v30  }
 0x1d4   :  { %v419_v38 = vpop.permute.xlu0 %418  ;;  %v491_v2 = vpop.permute.xlu1 %490 }
 0x1d5   :  { %v420_v47 = vmul.f32 %v419_v38, %v893_v41  ;;  %v492_v8 = vmul.f32 %v491_v2, %v915_v4 }
 0x1d7   :  { %v428_v53 = vmul.f32 %v426_v31, %v420_v47  ;;  %v500_v10 = vmul.f32 %v498_v49, %v492_v8 }
 0x1d8   :  { %v431_v39 = vpop.permute.xlu0 %430 }
 0x1d9   :  { %v432_v50 = vmul.f32 %v431_v39, %v898_v45  ;;  %v429_v60 = vadd.f32 %v428_v53, %v417_v55 }
 0x1db   :  { %v440_v56 = vmul.f32 %v438_v35, %v432_v50 }
 0x1dc   :  { %v443_v44 = vpop.permute.xlu0 %442 }
 0x1dd   :  { %v444_v54 = vmul.f32 %v443_v44, %v904_v48  ;;  %v441_v0 = vadd.f32 %v440_v56, %v429_v60 }
 0x1df   :  { %v452_v61 = vmul.f32 %v450_v32, %v444_v54 }
 0x1e0   :  { %v455_v51 = vpop.permute.xlu0 %454 }
 0x1e1   :  { %v456_v57 = vmul.f32 %v455_v51, %v908_v52  ;;  %v453_v3 = vadd.f32 %v452_v61, %v441_v0  ;;  %v503_v52 = vpop.permute.xlu1 %502 }
 0x1e2   :  { %v504_v12 = vmul.f32 %v503_v52, %v922_v17 }
 0x1e3   :  { %v464_v1 = vmul.f32 %v462_v34, %v456_v57 }
 0x1e4   :  { %v467_v58 = vpop.permute.xlu0 %466 }
 0x1e5   :  { %v468_v62 = vmul.f32 %v467_v58, %v913_v63  ;;  %v465_v7 = vadd.f32 %v464_v1, %v453_v3  ;;  %v512_v63 = vmul.f32 %v510_v59, %v504_v12 }
 0x1e7   :  { %v476_v6 = vmul.f32 %v474_v37, %v468_v62 }
 0x1e8   :  { %v479_v41 = vpop.permute.xlu0 %478 }
 0x1e9   :  { %v480_v45 = vmul.f32 %v479_v41, %v917_v5  ;;  %v477_v9 = vadd.f32 %v476_v6, %v465_v7  ;;  %v543_v19 = vpop.permute.xlu1 %542 }
 0x1eb   :  { %v488_v48 = vmul.f32 %v486_v43, %v480_v45 }
 0x1ed   :  { %v489_v11 = vadd.f32 %v488_v48, %v477_v9  ;;  %v569_v26 = vpop.permute.xlu1 %568 }
 0x1ef   :  { %v501_v13 = vadd.f32 %v500_v10, %v489_v11 }
 0x1f1   :  { %v513_v14 = vadd.f32 %v512_v63, %v501_v13  ;;  %v590_v32 = vpop.permute.xlu1 %589 }
 0x1f5   :  { %v615_v47 = vpop.permute.xlu1 %614 }
 0x1f9   :  { %v519_v15 = vpop.permute.xlu0 %518  ;;  %v636_v56 = vpop.permute.xlu1 %635 }
 0x1fa   :  { %v521_v16 = vadd.f32 %v519_v15, %v513_v14 }
 0x1fc   :  { %v527_v18 = vrot.slane %v521_v16, %v885_v36  ;;  %v539_v5 = vrot.slane %v521_v16, %v890_v40  ;;  %v552_v4 = vrot.slane %v521_v16, %v895_v42  ;;  %v565_v23 = vrot.slane %v521_v16, %v900_v46 }
 0x1fd   :  { %v531_v20 = vpop.permute.xlu0 %530 }
 0x1fe   :  { %v533_v21 = vmul.f32 %v531_v20, %v527_v18  ;;  %v545_v22 = vmul.f32 %v543_v19, %v539_v5  ;;  %v571_v28 = vmul.f32 %v569_v26, %v565_v23 }
 0x200   :  { %v546_v25 = vadd.f32 %v545_v22, %v533_v21 }
 0x201   :  { %v556_v24 = vpop.permute.xlu0 %555 }
 0x202   :  { %v558_v17 = vmul.f32 %v556_v24, %v552_v4 }
 0x204   :  { %v559_v27 = vadd.f32 %v558_v17, %v546_v25 }
 0x205   :  { %v578_v29 = vpop.permute.xlu0 %577 }
 0x206   :  { %v572_v30 = vadd.f32 %v571_v28, %v559_v27 }
 0x208   :  { %v580_v31 = vadd.f32 %v578_v29, %v572_v30 }
 0x209   :  { %v602_v33 = vpop.permute.xlu0 %601 }
 0x20a   :  { %v581_v34 = vmax.f32 %v580_v31, 0.0 }
 0x20c   :  { %v586_v35 = vrot.slane %v581_v34, %v885_v36  ;;  %v598_v37 = vrot.slane %v581_v34, %v890_v40  ;;  %v611_v38 = vrot.slane %v581_v34, %v895_v42  ;;  %v624_v44 = vrot.slane %v581_v34, %v900_v46 }
 0x20d   :  { %v628_v49 = vpop.permute.xlu0 %627 }
 0x20e   :  { %v592_v39 = vmul.f32 %v590_v32, %v586_v35  ;;  %v604_v43 = vmul.f32 %v602_v33, %v598_v37  ;;  %v617_v51 = vmul.f32 %v615_v47, %v611_v38  ;;  %v630_v54 = vmul.f32 %v628_v49, %v624_v44 }
 0x210   :  { %v605_v50 = vadd.f32 %v604_v43, %v592_v39 }
 0x212   :  { %v618_v53 = vadd.f32 %v617_v51, %v605_v50 }
 0x214   :  { %v631_v55 = vadd.f32 %v630_v54, %v618_v53 }
 0x216   :  { %v638_v57 = vadd.f32 %v636_v56, %v631_v55 }
 0x218   :  { %639 = vst [vmem:[#allocation2] sm:$0xff] %v638_v57 }
 0x219   :  { %721 = shalt.err (!%p718_p4)
}
 0x21a   :  { %s722_s26 = scalar_lea.hbm %s1071_s8, 128 }
 0x21b   :  { %p723_p5 = scmp.ne.s32.totalorder %s1071_s8, %s722_s26  ;;  %p726_p6 = scmp.lt.u32.totalorder %s722_s26, %s1071_s8 }
 0x21d   :  { %p728_p7 = pnand %p726_p6, %p723_p5 }
 0x21f   :  { %731 = shalt.err (!%p728_p7)
}
 0x220   :  { %649 = dma.vmem_to_hbm [thread:$0]  %s647_s5, 128, %s1071_s8, [#allocation3]  }
 0x221   :  { %732 = dma.done.wait [#allocation3], 128  }
 0x222   :  { %733 = vsyncadd [#allocation3], 4294967168 }
 0x223   :  { %653 = vsyncpa [#allocation3], 1 }

</bundles_post_ra>
